<compile_context>
chip_gen: v5e
topology: v5e:2x2
jax: 0.10.0
libtpu: 0.0.40
codegen_flags: <defaults>
</compile_context>

<pallas_src>
import jax
import jax.numpy as jnp
import numpy as np
from jax.experimental import pallas as pl
from jax.experimental.pallas import tpu as pltpu

OUT_CHANNEL = 8
KMIN, KMAX = 2, 10                     # conv kernel heights 2..9
NUM_BLOCKS = KMAX - KMIN               # 8
SEQ_LEN = 41
WIDTH = 4
HMAX = SEQ_LEN - KMIN + 1              # 40 output positions (smallest kernel)
FEAT = NUM_BLOCKS * OUT_CHANNEL        # 64 concatenated conv features
HID = 16
K_IN = SEQ_LEN * WIDTH                 # 164 = contraction dim of the fused conv matmul
N_COLS = HMAX * FEAT                   # 2560 = 40 positions x 64 features (lane-dense)
NEG_BIAS = -1e9                        # bias for invalid (position, block) columns


def _round_up(n, m):
    return ((n + m - 1) // m) * m


def seqcnn_kernel(x_ref, wbig_ref, bias_ref, wf_ref, bf_ref, out_ref):
    # All 8 conv blocks at all positions: one MXU matmul (TB,164) @ (164,2560).
    # Invalid (position, block) columns have zero weights and bias = -1e9, so they
    # come out of the ELU as exactly -1 and never win the max-pool below.
    s = jnp.dot(x_ref[...], wbig_ref[...], preferred_element_type=jnp.float32)
    s = s + bias_ref[...]                                   # (1, 2560) broadcast over batch

    # ELU(alpha=1).  exp(min(s,0)) keeps the discarded positive branch finite (no inf),
    # and maps the -1e9 invalid columns to exactly -1.
    e = jnp.where(s > 0, s, jnp.exp(jnp.minimum(s, 0.0)) - 1.0)

    # TODO(synk): nn.Dropout(p=0.1) is train-mode stochastic in the reference forward;
    # treated as identity (inference semantics) here.

    # MaxPool1d over the full length == max over positions.
    # Column layout is pos*64 + feat, so each 128-lane tile holds two positions.
    # Fold the 20 lane tiles with VPU maxima (128-aligned slices are cheap), then
    # fold the two 64-lane halves with one XLU roll.
    m = e[:, 0:2 * FEAT]
    for g in range(1, HMAX // 2):
        m = jnp.maximum(m, e[:, g * 2 * FEAT:(g + 1) * 2 * FEAT])
    m = jnp.maximum(m, pltpu.roll(m, shift=FEAT, axis=1))
    feat = m[:, :FEAT]                                      # (TB, 64)

    # classifier1 + classifier2 fused offline into one (64,1) linear; Sigmoid.
    logit = jnp.dot(feat, wf_ref[...], preferred_element_type=jnp.float32) + bf_ref[...]
    out_ref[...] = jax.nn.sigmoid(logit).astype(out_ref.dtype)


def seqcnn_forward(t_x, packed_params, tb=512):
    """t_x: (B, 1, 41, 4) float32 (NCHW, as in the PyTorch module)."""
    wbig, bias_row, wf, bf = packed_params
    B = t_x.shape[0]

    # Raw input only (656 B/sample): flatten row-major.  No column padding needed,
    # since invalid positions are handled via the fused bias.
    x = t_x[:, 0].astype(jnp.float32).reshape(B, K_IN)                  # (B, 164)

    # Batch tiling: default tb=512 stays well inside v7x's 64 MiB VMEM; v5e/v6e
    # (128 MiB) can go larger.  tb is rounded to a sublane multiple and the batch is
    # zero-padded.
    tb = _round_up(max(1, min(tb, B)), 8)
    b_pad = _round_up(B, tb)
    if b_pad != B:
        x = jnp.pad(x, ((0, b_pad - B), (0, 0)))
    grid = (b_pad // tb,)

    cost = pl.CostEstimate(
        flops=2 * b_pad * K_IN * N_COLS + 2 * b_pad * FEAT,
        transcendentals=b_pad * N_COLS + b_pad,
        bytes_accessed=4 * (b_pad * K_IN + K_IN * N_COLS + N_COLS + FEAT + 1 + b_pad),
    )

    out = pl.pallas_call(
        seqcnn_kernel,
        grid=grid,
        in_specs=[
            pl.BlockSpec((tb, K_IN), lambda i: (i, 0)),       # per-tile raw input
            pl.BlockSpec((K_IN, N_COLS), lambda i: (0, 0)),   # fused block-Toeplitz conv weight
            pl.BlockSpec((1, N_COLS), lambda i: (0, 0)),      # conv bias (+ invalid-col sink)
            pl.BlockSpec((FEAT, 1), lambda i: (0, 0)),        # fused classifier weight
            pl.BlockSpec((1, 1), lambda i: (0, 0)),           # fused classifier bias
        ],
        out_specs=pl.BlockSpec((tb, 1), lambda i: (i, 0)),
        out_shape=jax.ShapeDtypeStruct((b_pad, 1), jnp.float32),
        compiler_params=pltpu.CompilerParams(
            dimension_semantics=("parallel",),                # megacore sharding on v7x
            vmem_limit_bytes=48 * 1024 * 1024,
        ),
        cost_estimate=cost,
    )(x, wbig, bias_row, wf, bf)
    return out[:B]


def init_params(key):
    """Deterministic synthetic parameters in PyTorch layouts, plus packed kernel layouts."""
    keys = jax.random.split(key, 2 * NUM_BLOCKS + 4)
    conv_ws, conv_bs = [], []

    # Block-Toeplitz fused conv weight: row j = flattened input index (seq_pos*4 + base),
    # column = output_position*64 + (block*8 + out_channel).  Only valid positions get
    # weights; invalid columns stay zero and receive a large negative bias instead of a
    # separate mask input.
    wbig = np.zeros((K_IN, N_COLS), np.float32)
    bias64 = np.zeros((FEAT,), np.float32)
    for i, k in enumerate(range(KMIN, KMAX)):
        w = 0.5 * jax.random.normal(keys[i], (OUT_CHANNEL, 1, k, WIDTH), jnp.float32)
        b = 0.5 * jax.random.normal(keys[NUM_BLOCKS + i], (OUT_CHANNEL,), jnp.float32)
        conv_ws.append(w)
        conv_bs.append(b)
        wflat = np.asarray(w)[:, 0].reshape(OUT_CHANNEL, k * WIDTH).T     # (k*4, 8)
        n_valid = SEQ_LEN - k + 1
        for h in range(n_valid):
            col0 = h * FEAT + i * OUT_CHANNEL
            wbig[h * WIDTH:(h + k) * WIDTH, col0:col0 + OUT_CHANNEL] = wflat
        bias64[i * OUT_CHANNEL:(i + 1) * OUT_CHANNEL] = np.asarray(b)

    bias_row = np.tile(bias64, HMAX).astype(np.float32)
    # Column h*64+f is a valid conv position iff h < 42 - k = HMAX - block(f).
    h_idx = np.repeat(np.arange(HMAX), FEAT)
    blk_idx = np.tile(np.arange(FEAT) // OUT_CHANNEL, HMAX)
    bias_row[h_idx >= (HMAX - blk_idx)] = NEG_BIAS
    bias_row = bias_row.reshape(1, N_COLS)

    W1 = 0.5 * jax.random.normal(keys[-4], (HID, FEAT), jnp.float32)   # torch Linear(64,16).weight
    B1 = 0.5 * jax.random.normal(keys[-3], (HID,), jnp.float32)
    W2 = 0.5 * jax.random.normal(keys[-2], (1, HID), jnp.float32)      # torch Linear(16,1).weight
    B2 = 0.5 * jax.random.normal(keys[-1], (1,), jnp.float32)

    # Fuse classifier1/classifier2 offline (no activation between them in this forward).
    W1n, B1n = np.asarray(W1, np.float64), np.asarray(B1, np.float64)
    W2n, B2n = np.asarray(W2, np.float64), np.asarray(B2, np.float64)
    wf = (W1n.T @ W2n.T).astype(np.float32)                             # (64, 1)
    bf = (B1n.reshape(1, HID) @ W2n.T + B2n.reshape(1, 1)).astype(np.float32)

    packed = (jnp.asarray(wbig), jnp.asarray(bias_row), jnp.asarray(wf), jnp.asarray(bf))
    torch_style = (conv_ws, conv_bs, W1, B1, W2, B2)
    return packed, torch_style


def reference_forward(t_x, torch_style):
    """Pure-JAX reference mirroring the PyTorch forward (dropout as identity)."""
    conv_ws, conv_bs, W1, B1, W2, B2 = torch_style
    x = t_x[:, 0].astype(jnp.float32)                                   # (B, 41, 4)
    feats = []
    for w, b in zip(conv_ws, conv_bs):
        k = w.shape[2]
        H = SEQ_LEN - k + 1
        windows = jnp.stack([x[:, h:h + k, :] for h in range(H)], axis=1)  # (B, H, k, 4)
        s = jnp.einsum('bhij,cij->bhc', windows, w[:, 0]) + b
        e = jnp.where(s > 0, s, jnp.exp(s) - 1.0)                       # ELU
        feats.append(jnp.max(e, axis=1))                                # MaxPool1d (full length)
    feat = jnp.concatenate(feats, axis=1)                               # (B, 64)
    h1 = feat @ W1.T + B1
    h2 = h1 @ W2.T + B2
    return jax.nn.sigmoid(h2)                                           # (B, 1)


if __name__ == "__main__":
    key = jax.random.PRNGKey(0)
    pkey, xkey = jax.random.split(key)
    packed, torch_style = init_params(pkey)

    B = 16
    t_x = jax.random.normal(xkey, (B, 1, SEQ_LEN, WIDTH), jnp.float32)  # NCHW input

    out = seqcnn_forward(t_x, packed, tb=8)          # 2 batch tiles -> exercises the grid
    out = jax.block_until_ready(out)

    ref = reference_forward(t_x, torch_style)
    # atol covers f32 reassociation from the offline classifier fusion / fused conv matmul.
    np.testing.assert_allclose(np.asarray(out), np.asarray(ref), rtol=1e-5, atol=5e-5)

    print("KERNEL_OK")
</pallas_src>

<mosaic_0001>
module attributes {stable_mosaic.version = 11 : i64} {
  func.func @seqcnn_kernel(%arg0: i32, %arg1: memref<8x164xf32, #tpu.memory_space<vmem>>, %arg2: memref<164x2560xf32, #tpu.memory_space<vmem>>, %arg3: memref<1x2560xf32, #tpu.memory_space<vmem>>, %arg4: memref<64x1xf32, #tpu.memory_space<vmem>>, %arg5: memref<1x1xf32, #tpu.memory_space<vmem>>, %arg6: memref<8x1xf32, #tpu.memory_space<vmem>>) attributes {dimension_semantics = [#tpu.dimension_semantics<parallel>], iteration_bounds = array<i64: 2>, scalar_prefetch = 0 : i64, scratch_operands = 0 : i64, tpu.core_type = #tpu.core_type<tc>, window_params = [{transform_indices = @transform_0, window_bounds = array<i64: 8, 164>}, {pipeline_mode = #tpu.pipeline_mode<synchronous>, transform_indices = @transform_1, window_bounds = array<i64: 164, 2560>}, {pipeline_mode = #tpu.pipeline_mode<synchronous>, transform_indices = @transform_2, window_bounds = array<i64: 1, 2560>}, {pipeline_mode = #tpu.pipeline_mode<synchronous>, transform_indices = @transform_3, window_bounds = array<i64: 64, 1>}, {pipeline_mode = #tpu.pipeline_mode<synchronous>, transform_indices = @transform_4, window_bounds = array<i64: 1, 1>}, {transform_indices = @transform_5, window_bounds = array<i64: 8, 1>}]} {
    %c0 = arith.constant 0 : index
    %c0_0 = arith.constant 0 : index
    %0 = vector.load %arg1[%c0, %c0_0] : memref<8x164xf32, #tpu.memory_space<vmem>>, vector<8x164xf32>
    %c0_1 = arith.constant 0 : index
    %c0_2 = arith.constant 0 : index
    %1 = vector.load %arg2[%c0_1, %c0_2] : memref<164x2560xf32, #tpu.memory_space<vmem>>, vector<164x2560xf32>
    %cst = arith.constant dense<0.000000e+00> : vector<8x2560xf32>
    %2 = tpu.matmul %0, %1, %cst {dimension_numbers = #tpu.dot_dimension_numbers<[1], [0], [0], [1], [0, 0, 1, 1], [], []>} : vector<8x164xf32>, vector<164x2560xf32>, vector<8x2560xf32> -> vector<8x2560xf32>
    %c0_3 = arith.constant 0 : index
    %c0_4 = arith.constant 0 : index
    %3 = vector.load %arg3[%c0_3, %c0_4] : memref<1x2560xf32, #tpu.memory_space<vmem>>, vector<1x2560xf32>
    %4 = vector.broadcast %3 : vector<1x2560xf32> to vector<8x2560xf32>
    %5 = arith.addf %2, %4 : vector<8x2560xf32>
    %cst_5 = arith.constant 0.000000e+00 : f32
    %6 = vector.broadcast %cst_5 : f32 to vector<8x2560xf32>
    %7 = arith.cmpf ogt, %5, %6 : vector<8x2560xf32>
    %cst_6 = arith.constant 0.000000e+00 : f32
    %8 = vector.broadcast %cst_6 : f32 to vector<8x2560xf32>
    %9 = arith.minimumf %5, %8 : vector<8x2560xf32>
    %10 = math.exp %9 : vector<8x2560xf32>
    %cst_7 = arith.constant 1.000000e+00 : f32
    %11 = vector.broadcast %cst_7 : f32 to vector<8x2560xf32>
    %12 = arith.subf %10, %11 : vector<8x2560xf32>
    %13 = arith.select %7, %5, %12 : vector<8x2560xi1>, vector<8x2560xf32>
    %14 = vector.extract_strided_slice %13 {offsets = [0, 0], sizes = [8, 128], strides = [1, 1]} : vector<8x2560xf32> to vector<8x128xf32>
    %15 = vector.extract_strided_slice %13 {offsets = [0, 128], sizes = [8, 128], strides = [1, 1]} : vector<8x2560xf32> to vector<8x128xf32>
    %16 = arith.maximumf %14, %15 : vector<8x128xf32>
    %17 = vector.extract_strided_slice %13 {offsets = [0, 256], sizes = [8, 128], strides = [1, 1]} : vector<8x2560xf32> to vector<8x128xf32>
    %18 = arith.maximumf %16, %17 : vector<8x128xf32>
    %19 = vector.extract_strided_slice %13 {offsets = [0, 384], sizes = [8, 128], strides = [1, 1]} : vector<8x2560xf32> to vector<8x128xf32>
    %20 = arith.maximumf %18, %19 : vector<8x128xf32>
    %21 = vector.extract_strided_slice %13 {offsets = [0, 512], sizes = [8, 128], strides = [1, 1]} : vector<8x2560xf32> to vector<8x128xf32>
    %22 = arith.maximumf %20, %21 : vector<8x128xf32>
    %23 = vector.extract_strided_slice %13 {offsets = [0, 640], sizes = [8, 128], strides = [1, 1]} : vector<8x2560xf32> to vector<8x128xf32>
    %24 = arith.maximumf %22, %23 : vector<8x128xf32>
    %25 = vector.extract_strided_slice %13 {offsets = [0, 768], sizes = [8, 128], strides = [1, 1]} : vector<8x2560xf32> to vector<8x128xf32>
    %26 = arith.maximumf %24, %25 : vector<8x128xf32>
    %27 = vector.extract_strided_slice %13 {offsets = [0, 896], sizes = [8, 128], strides = [1, 1]} : vector<8x2560xf32> to vector<8x128xf32>
    %28 = arith.maximumf %26, %27 : vector<8x128xf32>
    %29 = vector.extract_strided_slice %13 {offsets = [0, 1024], sizes = [8, 128], strides = [1, 1]} : vector<8x2560xf32> to vector<8x128xf32>
    %30 = arith.maximumf %28, %29 : vector<8x128xf32>
    %31 = vector.extract_strided_slice %13 {offsets = [0, 1152], sizes = [8, 128], strides = [1, 1]} : vector<8x2560xf32> to vector<8x128xf32>
    %32 = arith.maximumf %30, %31 : vector<8x128xf32>
    %33 = vector.extract_strided_slice %13 {offsets = [0, 1280], sizes = [8, 128], strides = [1, 1]} : vector<8x2560xf32> to vector<8x128xf32>
    %34 = arith.maximumf %32, %33 : vector<8x128xf32>
    %35 = vector.extract_strided_slice %13 {offsets = [0, 1408], sizes = [8, 128], strides = [1, 1]} : vector<8x2560xf32> to vector<8x128xf32>
    %36 = arith.maximumf %34, %35 : vector<8x128xf32>
    %37 = vector.extract_strided_slice %13 {offsets = [0, 1536], sizes = [8, 128], strides = [1, 1]} : vector<8x2560xf32> to vector<8x128xf32>
    %38 = arith.maximumf %36, %37 : vector<8x128xf32>
    %39 = vector.extract_strided_slice %13 {offsets = [0, 1664], sizes = [8, 128], strides = [1, 1]} : vector<8x2560xf32> to vector<8x128xf32>
    %40 = arith.maximumf %38, %39 : vector<8x128xf32>
    %41 = vector.extract_strided_slice %13 {offsets = [0, 1792], sizes = [8, 128], strides = [1, 1]} : vector<8x2560xf32> to vector<8x128xf32>
    %42 = arith.maximumf %40, %41 : vector<8x128xf32>
    %43 = vector.extract_strided_slice %13 {offsets = [0, 1920], sizes = [8, 128], strides = [1, 1]} : vector<8x2560xf32> to vector<8x128xf32>
    %44 = arith.maximumf %42, %43 : vector<8x128xf32>
    %45 = vector.extract_strided_slice %13 {offsets = [0, 2048], sizes = [8, 128], strides = [1, 1]} : vector<8x2560xf32> to vector<8x128xf32>
    %46 = arith.maximumf %44, %45 : vector<8x128xf32>
    %47 = vector.extract_strided_slice %13 {offsets = [0, 2176], sizes = [8, 128], strides = [1, 1]} : vector<8x2560xf32> to vector<8x128xf32>
    %48 = arith.maximumf %46, %47 : vector<8x128xf32>
    %49 = vector.extract_strided_slice %13 {offsets = [0, 2304], sizes = [8, 128], strides = [1, 1]} : vector<8x2560xf32> to vector<8x128xf32>
    %50 = arith.maximumf %48, %49 : vector<8x128xf32>
    %51 = vector.extract_strided_slice %13 {offsets = [0, 2432], sizes = [8, 128], strides = [1, 1]} : vector<8x2560xf32> to vector<8x128xf32>
    %52 = arith.maximumf %50, %51 : vector<8x128xf32>
    %c64_i32 = arith.constant 64 : i32
    %53 = tpu.dynamic_rotate %52 by %c64_i32 dim 1 : vector<8x128xf32>, i32 -> vector<8x128xf32>
    %54 = arith.maximumf %52, %53 : vector<8x128xf32>
    %55 = vector.extract_strided_slice %54 {offsets = [0, 0], sizes = [8, 64], strides = [1, 1]} : vector<8x128xf32> to vector<8x64xf32>
    %c0_8 = arith.constant 0 : index
    %c0_9 = arith.constant 0 : index
    %56 = vector.load %arg4[%c0_8, %c0_9] : memref<64x1xf32, #tpu.memory_space<vmem>>, vector<64x1xf32>
    %cst_10 = arith.constant dense<0.000000e+00> : vector<8x1xf32>
    %57 = tpu.matmul %55, %56, %cst_10 {dimension_numbers = #tpu.dot_dimension_numbers<[1], [0], [0], [1], [0, 0, 1, 1], [], []>} : vector<8x64xf32>, vector<64x1xf32>, vector<8x1xf32> -> vector<8x1xf32>
    %c0_11 = arith.constant 0 : index
    %c0_12 = arith.constant 0 : index
    %58 = vector.load %arg5[%c0_11, %c0_12] : memref<1x1xf32, #tpu.memory_space<vmem>>, vector<1x1xf32>
    %59 = vector.broadcast %58 : vector<1x1xf32> to vector<8x1xf32>
    %60 = arith.addf %57, %59 : vector<8x1xf32>
    %61 = arith.negf %60 : vector<8x1xf32>
    %62 = math.exp %61 : vector<8x1xf32>
    %cst_13 = arith.constant 1.000000e+00 : f32
    %63 = vector.broadcast %cst_13 : f32 to vector<8x1xf32>
    %64 = arith.addf %63, %62 : vector<8x1xf32>
    %65 = arith.divf %63, %64 : vector<8x1xf32>
    %c0_14 = arith.constant 0 : index
    %c0_15 = arith.constant 0 : index
    %66 = vector.load %arg6[%c0_14, %c0_15] : memref<8x1xf32, #tpu.memory_space<vmem>>, vector<8x1xf32>
    tpu.vector_store %arg6[%c0_14, %c0_15], %65 {strides = array<i32>} : memref<8x1xf32, #tpu.memory_space<vmem>>, vector<8x1xf32>,
    return
  }
  func.func @transform_0(%arg0: i32) -> (i32, i32) {
    %c0_i32 = arith.constant 0 : i32
    %c0_i32_0 = arith.constant 0 : i32
    return %arg0, %c0_i32 : i32, i32
  }
  func.func @transform_1(%arg0: i32) -> (i32, i32) {
    %c0_i32 = arith.constant 0 : i32
    %c0_i32_0 = arith.constant 0 : i32
    %c0_i32_1 = arith.constant 0 : i32
    return %c0_i32, %c0_i32_0 : i32, i32
  }
  func.func @transform_2(%arg0: i32) -> (i32, i32) {
    %c0_i32 = arith.constant 0 : i32
    %c0_i32_0 = arith.constant 0 : i32
    %c0_i32_1 = arith.constant 0 : i32
    return %c0_i32, %c0_i32_0 : i32, i32
  }
  func.func @transform_3(%arg0: i32) -> (i32, i32) {
    %c0_i32 = arith.constant 0 : i32
    %c0_i32_0 = arith.constant 0 : i32
    %c0_i32_1 = arith.constant 0 : i32
    return %c0_i32, %c0_i32_0 : i32, i32
  }
  func.func @transform_4(%arg0: i32) -> (i32, i32) {
    %c0_i32 = arith.constant 0 : i32
    %c0_i32_0 = arith.constant 0 : i32
    %c0_i32_1 = arith.constant 0 : i32
    return %c0_i32, %c0_i32_0 : i32, i32
  }
  func.func @transform_5(%arg0: i32) -> (i32, i32) {
    %c0_i32 = arith.constant 0 : i32
    %c0_i32_0 = arith.constant 0 : i32
    return %arg0, %c0_i32 : i32, i32
  }
}

</mosaic_0001>

<bundles_post_ra>
// kernel: tpu_custom_call.1
= control target key start
LH: loop header
LB: loop body
LE: loop exit
PB: predicated region body
PF: predicated region fallthrough
CT: control target
= control target key end

     0   :  { %s2587_s0 = inlined_call_operand.hbm [shape: f32[16,164], index: 0, kind: input, shape index: {}]   ;;  %s2588_s1 = inlined_call_operand.hbm [shape: f32[164,2560], index: 1, kind: input, shape index: {}]   ;;  %s2589_s2 = inlined_call_operand.hbm [shape: f32[1,2560], index: 2, kind: input, shape index: {}]   ;;  %s2590_s3 = inlined_call_operand.vmem [shape: f32[64,1], index: 3, kind: input, shape index: {}]   ;;  %s2591_s4 = inlined_call_operand.<no memory space> [shape: f32[1,1], index: 4, kind: input, shape index: {}]   ;;  %s2592_s5 = inlined_call_operand.vmem [shape: f32[16,1], index: 5, kind: output, shape index: {}]  }
   0x1   :  { %v10_v0 = vstv %s2591_s4 }
   0x2   :  { %11 = vst [vmem:[#allocation2] sm:$0x1] %v10_v0 }
   0x3   :  { %12 = vsyncpa [#allocation4], 0 }
   0x4   :  { %14 = vsyncpa [#allocation4 + $0x1], 0 }
   0x5   :  { %15 = vsyncpa [#allocation6], 0  ;;  %s2248_s20 = smov 0   ;;  %s2250_s21 = smov 0  }
   0x6   :  { %s2252_s22 = smov 0   ;;  %s2254_s23 = smov 0  }
   0x7 LB: > { %s173_s25 = sshll.u32 %s2588_s1, 4  ;;  %s2272_s26 = sadd.s32 4294967295, %s2208_s23   ;;  %s2208_s23 = sphi %s2254_s23, %s2599_s23   ;;  %s2204_s22 = sphi %s2252_s22, %s2598_s22   ;;  %s2200_s21 = sphi %s2250_s21, %s2597_s21   ;;  %s2196_s20 = sphi %s2248_s20, %s2596_s20   ;;  %s174_s25 = int_to_ptr.hbm [resolvable:$true] %s173_s25 }
   0x8   : > { %p1893_p0 = scmp.ge.s32.totalorder %s2208_s23, 1  ;;  %p42_p1 = scmp.eq.s32.totalorder %s2272_s26, 0 }
   0x9   : > { %p162_p2 = scmp.lt.s32.totalorder %s2208_s23, 3  ;;  %s2210_s28 = smov [#allocation5]  }
   0xa   : > { %s175_s29 = sshll.u32 %s2210_s28, 4  ;;  %s188_s7 = sshll.u32 %s2589_s2, 4  ;;  %s176_s29 = int_to_ptr.vmem [resolvable:$true] %s175_s29  ;;  %s189_s7 = int_to_ptr.hbm [resolvable:$true] %s188_s7 }
   0xb   : > { %p2277_p3 = pnand %p1893_p0, %p162_p2  ;;  %s2211_s8 = smov [#allocation7]  }
   0xc   : > { %s190_s9 = sshll.u32 %s2211_s8, 4  ;;  %s2212_s10 = smov 2560   ;;  %s191_s9 = int_to_ptr.vmem [resolvable:$true] %s190_s9 }
   0xd   : > { %p1980_p4 = pneg %p2277_p3  ;;  %s2213_s11 = smov 160  }
   0xe   : > { %s2289_s12 = sadd.s32 1, %s2208_s23   ;;  %s28_s14 = sadd.s32 1, %s2204_s22 }
   0xf   : > { %p1981_p5 = pnand %p1980_p4, %p42_p1  ;;  %s25_s13 = ssub.s32 %s2208_s23, %s2289_s12 }
  0x10   : > { %p26_p6 = scmp.eq.s32.totalorder %s25_s13, 0  ;;  %p35_p7 = scmp.ne.s32.totalorder %s2204_s22, %s2200_s21 }
  0x11   : > { %1983 = dma.hbm_to_vmem [thread:$0]  (!%p1981_p5), %s174_s25, 53760, %s176_s29, [#allocation6], %s2212_s10, %s2212_s10, %s2213_s11  }
  0x12   : > { %1986 = dma.hbm_to_vmem [thread:$0]  (!%p1981_p5), %s189_s7, 320, %s191_s9, [#allocation6]  }
  0x13   : > { %p36_p8 = scmp.eq.s32.totalorder %s2208_s23, 0  ;;  %p41_p9 = scmp.ne.s32.totalorder %s2200_s21, %s2196_s20 }
  0x14   : > { %s2300_s15 = scalar_select %p26_p6, %s2204_s22, %s28_s14  }
  0x15   : > { %p2304_p10 = por %p42_p1, %p41_p9  ;;  %p1993_p11 = scmp.lt.s32.totalorder %s2208_s23, 2 }
  0x16   : > { %s207_s17 = sand.u32 1, %s2204_s22   ;;  %s1969_s18 = sshll.u32 %s2208_s23, 4 }
  0x17   : > { %p37_p12 = por %p36_p8, %p35_p7  ;;  %s1897_s19 = sshll.u32 %s207_s17, 4 }
  0x18   : > { %s216_s25 = scalar_lea.hbm %s2587_s0, %s1969_s18  ;;  %s211_s29 = scalar_lea.vmem [#allocation3], %s1897_s19 }
  0x19   : > { %s218_s28 = sshll.u32 %s216_s25, 4  ;;  %s220_s30 = sshll.u32 %s211_s29, 4  ;;  %s219_s28 = int_to_ptr.hbm [resolvable:$true] %s218_s28  ;;  %s221_s30 = int_to_ptr.vmem [resolvable:$true] %s220_s30 }
  0x1a   : > { %p2314_p13 = pnand %p1993_p11, %p37_p12  ;;  %s208_s6 = scalar_lea.sflag [#allocation4], %s207_s17 }
  0x1b   : > { %s2140_s7 = sshra.s32 %s219_s28, 4  ;;  %s2147_s10 = scalar_lea.hbm %s2587_s0, 32  ;;  %s2141_s7 = int_to_ptr.hbm [resolvable:$true] %s2140_s7 }
  0x1c   : > { %s2142_s23 = scalar_lea.hbm %s2141_s7, 16  ;;  %p2144_p2 = pneg %p2314_p13 }
  0x1d   : > { %p2143_p0 = scmp.ne.s32.totalorder %s2141_s7, %s2142_s23  ;;  %p2148_p6 = scmp.lt.s32.totalorder %s2141_s7, %s2587_s0 }
  0x1e   : > { %p2149_p7 = scmp.lt.s32.totalorder %s2147_s10, %s2142_s23 }
  0x1f   : > { %p2145_p4 = pnand %p2144_p2, %p2143_p0 }
  0x20   : > { %p2150_p8 = por %p2149_p7, %p2148_p6 }
  0x21   : > { %p2146_p5 = pneg %p2145_p4 }
  0x23   : > { %p2151_p9 = pnand %p2150_p8, %p2146_p5 }
  0x25   : > { %2154 = shalt.err (!%p2151_p9)
}
  0x26   : > { %1990 = dma.hbm_to_vmem [thread:$0]  (!%p2314_p13), %s219_s28, 256, %s221_s30, %s208_s6  }
  0x27   : > { %229 = sbr.rel (%p2277_p3) target bundleno = 705 (0x2c1), region = 40  ;;  %s231_s14 = sand.u32 (!%p2277_p3), 1, %s2200_s21  }
  0x28   : > { %s1901_s17 = sshll.u32 (!%p2277_p3), %s231_s14, 4  ;;  %s232_s18 = scalar_lea.sflag (!%p2277_p3), [#allocation4], %s231_s14 }
  0x29   : > { %s2331_s19 = scalar_lea.vmem (!%p2277_p3), [#allocation3], %s1901_s17 }
  0x2c   : > { %2187 = dma.done.wait (%p2304_p10), %s232_s18, 256  }
  0x2d   : > { %2189 = vsyncadd (%p2304_p10), %s232_s18, 4294967040 }
  0x2e   : > { %2191 = dma.done.wait (%p42_p1), [#allocation6], 54080  }
  0x2f   : > { %2193 = vsyncadd (%p42_p1), [#allocation6], 4294913216  ;;  %vm748_vm0 = vcmask 1043456   ;;  %v678_v1 = vld [vmem:[#allocation5 + $0xc80] sm:$0xf]  ;;  %v579_v2 = vld [vmem:[#allocation5 + $0x968] sm:$0xff] }
  0x30   : > { %v679_v3 = vld [vmem:[#allocation5 + $0xc88] sm:$0xf]  ;;  %1905 = vmatpush.msk.msra.mxu1 %vm748_vm0, %v678_v1  ;;  %849 = vmatpush.msra.mxu2 %v579_v2  ;;  %v658_v4 = vld [vmem:[#allocation5 + $0xbe0] sm:$0xff]  ;;  %v580_v19 = vld [vmem:[#allocation5 + $0x970] sm:$0xff]  ;;  %vm744_vm1 = vcmask 293888   ;;  %s2214_s8 = smov 64  }
  0x31   : > { %v559_v5 = vld [vmem:[#allocation5 + $0x8c8] sm:$0xff]  ;;  %1907 = vmatpush.msk.msra.mxu3 %vm748_vm0, %v679_v3  ;;  %v638_v7 = vld [vmem:[#allocation5 + $0xb40] sm:$0xff]  ;;  %v680_v20 = vld [vmem:[#allocation5 + $0xc90] sm:$0xf]  ;;  %p272_p1 = scmp.lt.s32.totalorder %s2272_s26, 1 }
  0x32   : > { %v659_v6 = vld [vmem:[#allocation5 + $0xbe8] sm:$0xff]  ;;  %841 = vmatpush.msra.mxu1 %v658_v4  ;;  %850 = vmatpush.msra.mxu2 %v559_v5  ;;  %v578_v10 = vld [vmem:[#allocation5 + $0x960] sm:$0xff]  ;;  %v560_v22 = vld [vmem:[#allocation5 + $0x8d0] sm:$0xff] }
  0x33   : > { %v539_v8 = vld [vmem:[#allocation5 + $0x828] sm:$0xff]  ;;  %881 = vmatpush.msra.mxu3 %v659_v6  ;;  %809 = vmatpush.msra.mxu0 %v578_v10  ;;  %v618_v11 = vld [vmem:[#allocation5 + $0xaa0] sm:$0xff]  ;;  %v660_v24 = vld [vmem:[#allocation5 + $0xbf0] sm:$0xff]  ;;  %s2601_s26 = smov (!%p272_p1, %s2272_s26), 1 }
  0x34   : > { %v639_v9 = vld [vmem:[#allocation5 + $0xb48] sm:$0xff]  ;;  %v558_v13 = vld [vmem:[#allocation5 + $0x8c0] sm:$0xff]  ;;  %842 = vmatpush.msra.mxu1 %v638_v7  ;;  %851 = vmatpush.msra.mxu2 %v539_v8  ;;  %v540_v26 = vld [vmem:[#allocation5 + $0x830] sm:$0xff]  ;;  %s1904_s14 = sshll.u32 %s2601_s26, 3 }
  0x35   : > { %v519_v12 = vld [vmem:[#allocation5 + $0x788] sm:$0xff]  ;;  %882 = vmatpush.msra.mxu3 %v639_v9  ;;  %810 = vmatpush.msra.mxu0 %v558_v13  ;;  %v598_v15 = vld [vmem:[#allocation5 + $0xa00] sm:$0xff]  ;;  %v640_v28 = vld [vmem:[#allocation5 + $0xb50] sm:$0xff] }
  0x36   : > { %v619_v14 = vld [vmem:[#allocation5 + $0xaa8] sm:$0xff]  ;;  %v538_v17 = vld [vmem:[#allocation5 + $0x820] sm:$0xff]  ;;  %843 = vmatpush.msra.mxu1 %v618_v11  ;;  %852 = vmatpush.msra.mxu2 %v519_v12  ;;  %v520_v30 = vld [vmem:[#allocation5 + $0x790] sm:$0xff] }
  0x37   : > { %v499_v16 = vld [vmem:[#allocation5 + $0x6e8] sm:$0xff]  ;;  %883 = vmatpush.msra.mxu3 %v619_v14  ;;  %811 = vmatpush.msra.mxu0 %v538_v17  ;;  %v518_v23 = vld [vmem:[#allocation5 + $0x780] sm:$0xff]  ;;  %v620_v32 = vld [vmem:[#allocation5 + $0xab0] sm:$0xff] }
  0x38   : > { %v599_v18 = vld [vmem:[#allocation5 + $0xa08] sm:$0xff]  ;;  %844 = vmatpush.msra.mxu1 %v598_v15  ;;  %853 = vmatpush.msra.mxu2 %v499_v16  ;;  %v498_v27 = vld [vmem:[#allocation5 + $0x6e0] sm:$0xff]  ;;  %v500_v34 = vld [vmem:[#allocation5 + $0x6f0] sm:$0xff] }
  0x39   : > { %v479_v21 = vld [vmem:[#allocation5 + $0x648] sm:$0xff]  ;;  %884 = vmatpush.msra.mxu3 %v599_v18  ;;  %812 = vmatpush.msra.mxu0 %v518_v23  ;;  %v478_v31 = vld [vmem:[#allocation5 + $0x640] sm:$0xff]  ;;  %v600_v36 = vld [vmem:[#allocation5 + $0xa10] sm:$0xff] }
  0x3a   : > { %889 = vmatpush.msrb.mxu1 %v580_v19  ;;  %v459_v25 = vld [vmem:[#allocation5 + $0x5a8] sm:$0xff]  ;;  %854 = vmatpush.msra.mxu2 %v479_v21  ;;  %v458_v35 = vld [vmem:[#allocation5 + $0x5a0] sm:$0xff]  ;;  %v480_v39 = vld [vmem:[#allocation5 + $0x650] sm:$0xff] }
  0x3b   : > { %1909 = vmatpush.msk.msrb.mxu3 %vm748_vm0, %v680_v20  ;;  %v439_v29 = vld [vmem:[#allocation5 + $0x508] sm:$0xff]  ;;  %813 = vmatpush.msra.mxu0 %v498_v27  ;;  %v581_v40 = vld [vmem:[#allocation5 + $0x978] sm:$0xff]  ;;  %v438_v41 = vld [vmem:[#allocation5 + $0x500] sm:$0xff] }
  0x3c   : > { %890 = vmatpush.msrb.mxu1 %v560_v22  ;;  %855 = vmatpush.msra.mxu2 %v459_v25  ;;  %v419_v33 = vld [vmem:[#allocation5 + $0x468] sm:$0xff]  ;;  %v460_v43 = vld [vmem:[#allocation5 + $0x5b0] sm:$0xff]  ;;  %v561_v44 = vld [vmem:[#allocation5 + $0x8d8] sm:$0xff] }
  0x3d   : > { %921 = vmatpush.msrb.mxu3 %v660_v24  ;;  %814 = vmatpush.msra.mxu0 %v478_v31  ;;  %v399_v37 = vld [vmem:[#allocation5 + $0x3c8] sm:$0xff]  ;;  %v418_v45 = vld [vmem:[#allocation5 + $0x460] sm:$0xff]  ;;  %v440_v47 = vld [vmem:[#allocation5 + $0x510] sm:$0xff] }
  0x3e   : > { %891 = vmatpush.msrb.mxu1 %v540_v26  ;;  %856 = vmatpush.msra.mxu2 %v439_v29  ;;  %v2345_v38 = vld [vmem:[%s2331_s19 + $0x8] sm:$0xff]  ;;  %v398_v49 = vld [vmem:[#allocation5 + $0x3c0] sm:$0xff]  ;;  %v420_v51 = vld [vmem:[#allocation5 + $0x470] sm:$0xff] }
  0x3f   : > { %922 = vmatpush.msrb.mxu3 %v640_v28  ;;  %815 = vmatpush.msra.mxu0 %v458_v35  ;;  %v379_v42 = vld [vmem:[#allocation5 + $0x328] sm:$0xff]  ;;  %v541_v48 = vld [vmem:[#allocation5 + $0x838] sm:$0xff]  ;;  %v378_v53 = vld [vmem:[#allocation5 + $0x320] sm:$0xff] }
  0x40   : > { %892 = vmatpush.msrb.mxu1 %v520_v30  ;;  %857 = vmatpush.msra.mxu2 %v419_v33  ;;  %v359_v46 = vld [vmem:[#allocation5 + $0x288] sm:$0xff]  ;;  %v521_v52 = vld [vmem:[#allocation5 + $0x798] sm:$0xff]  ;;  %v400_v55 = vld [vmem:[#allocation5 + $0x3d0] sm:$0xff] }
  0x41   : > { %923 = vmatpush.msrb.mxu3 %v620_v32  ;;  %816 = vmatpush.msra.mxu0 %v438_v41  ;;  %v339_v50 = vld [vmem:[#allocation5 + $0x1e8] sm:$0xff]  ;;  %v501_v56 = vld [vmem:[#allocation5 + $0x6f8] sm:$0xff]  ;;  %v358_v57 = vld [vmem:[#allocation5 + $0x280] sm:$0xff] }
  0x42   : > { %893 = vmatpush.msrb.mxu1 %v500_v34  ;;  %858 = vmatpush.msra.mxu2 %v399_v37  ;;  %v319_v54 = vld [vmem:[#allocation5 + $0x148] sm:$0xff]  ;;  %v380_v59 = vld [vmem:[#allocation5 + $0x330] sm:$0xff]  ;;  %v481_v60 = vld [vmem:[#allocation5 + $0x658] sm:$0xff] }
  0x43   : > { %924 = vmatpush.msrb.mxu3 %v600_v36  ;;  %817 = vmatpush.msra.mxu0 %v418_v45  ;;  %v299_v58 = vld [vmem:[#allocation5 + $0xa8] sm:$0xff]  ;;  %v338_v61 = vld [vmem:[#allocation5 + $0x1e0] sm:$0xff]  ;;  %v360_v63 = vld [vmem:[#allocation5 + $0x290] sm:$0xff] }
  0x44   : > { %1908 = vmatmul.msk.f32.vlgmr.msra.gmra.mxu3 %vm744_vm1, %v2345_v38  ;;  %894 = vmatpush.msrb.mxu1 %v480_v39  ;;  %v279_v62 = vld [vmem:[#allocation5 + $0x8] sm:$0xff]  ;;  %v461_v0 = vld [vmem:[#allocation5 + $0x5b8] sm:$0xff]  ;;  %v2350_v1 = vld [vmem:[%s2331_s19] sm:$0xff] }
  0x45   : > { %929 = vmatpush.msra.mxu3 %v581_v40  ;;  %859 = vmatpush.msra.mxu2 %v379_v42  ;;  %v681_v2 = vld [vmem:[#allocation5 + $0xc98] sm:$0xf]  ;;  %v318_v3 = vld [vmem:[#allocation5 + $0x140] sm:$0xff]  ;;  %v340_v5 = vld [vmem:[#allocation5 + $0x1f0] sm:$0xff] }
  0x46   : > { %895 = vmatpush.msrb.mxu1 %v460_v43  ;;  %818 = vmatpush.msra.mxu0 %v398_v49  ;;  %v441_v4 = vld [vmem:[#allocation5 + $0x518] sm:$0xff]  ;;  %v298_v7 = vld [vmem:[#allocation5 + $0xa0] sm:$0xff]  ;;  %v320_v9 = vld [vmem:[#allocation5 + $0x150] sm:$0xff] }
  0x47   : > { %930 = vmatpush.msra.mxu3 %v561_v44  ;;  %860 = vmatpush.msra.mxu2 %v359_v46  ;;  %v661_v6 = vld [vmem:[#allocation5 + $0xbf8] sm:$0xff]  ;;  %v278_v11 = vld [vmem:[#allocation5] sm:$0xff]  ;;  %v300_v13 = vld [vmem:[#allocation5 + $0xb0] sm:$0xff] }
  0x48   : > { %896 = vmatpush.msrb.mxu1 %v440_v47  ;;  %819 = vmatpush.msra.mxu0 %v378_v53  ;;  %v421_v8 = vld [vmem:[#allocation5 + $0x478] sm:$0xff]  ;;  %v682_v16 = vld [vmem:[#allocation5 + $0xca0] sm:$0xf]  ;;  %v280_v17 = vld [vmem:[#allocation5 + $0x10] sm:$0xff] }
  0x49   : > { %931 = vmatpush.msra.mxu3 %v541_v48  ;;  %861 = vmatpush.msra.mxu2 %v339_v50  ;;  %v641_v10 = vld [vmem:[#allocation5 + $0xb58] sm:$0xff]  ;;  %v582_v20 = vld [vmem:[#allocation5 + $0x980] sm:$0xff]  ;;  %v583_v21 = vld [vmem:[#allocation5 + $0x988] sm:$0xff] }
  0x4a   : > { %897 = vmatpush.msrb.mxu1 %v420_v51  ;;  %820 = vmatpush.msra.mxu0 %v358_v57  ;;  %v401_v12 = vld [vmem:[#allocation5 + $0x3d8] sm:$0xff]  ;;  %v662_v23 = vld [vmem:[#allocation5 + $0xc00] sm:$0xff]  ;;  %v563_v25 = vld [vmem:[#allocation5 + $0x8e8] sm:$0xff] }
  0x4b   : > { %932 = vmatpush.msra.mxu3 %v521_v52  ;;  %862 = vmatpush.msra.mxu2 %v319_v54  ;;  %v621_v14 = vld [vmem:[#allocation5 + $0xab8] sm:$0xff]  ;;  %v562_v24 = vld [vmem:[#allocation5 + $0x8e0] sm:$0xff]  ;;  %v543_v29 = vld [vmem:[#allocation5 + $0x848] sm:$0xff] }
  0x4c   : > { %898 = vmatpush.msrb.mxu1 %v400_v55  ;;  %821 = vmatpush.msra.mxu0 %v338_v61  ;;  %v381_v15 = vld [vmem:[#allocation5 + $0x338] sm:$0xff]  ;;  %v642_v27 = vld [vmem:[#allocation5 + $0xb60] sm:$0xff]  ;;  %v523_v33 = vld [vmem:[#allocation5 + $0x7a8] sm:$0xff] }
  0x4d   : > { %933 = vmatpush.msra.mxu3 %v501_v56  ;;  %863 = vmatpush.msra.mxu2 %v299_v58  ;;  %v601_v18 = vld [vmem:[#allocation5 + $0xa18] sm:$0xff]  ;;  %v542_v28 = vld [vmem:[#allocation5 + $0x840] sm:$0xff]  ;;  %v503_v37 = vld [vmem:[#allocation5 + $0x708] sm:$0xff] }
  0x4e   : > { %899 = vmatpush.msrb.mxu1 %v380_v59  ;;  %822 = vmatpush.msra.mxu0 %v318_v3  ;;  %v361_v19 = vld [vmem:[#allocation5 + $0x298] sm:$0xff]  ;;  %v622_v31 = vld [vmem:[#allocation5 + $0xac0] sm:$0xff]  ;;  %v584_v39 = vld [vmem:[#allocation5 + $0x990] sm:$0xff] }
  0x4f   : > { %934 = vmatpush.msra.mxu3 %v481_v60  ;;  %864 = vmatpush.msra.mxu2 %v279_v62  ;;  %v341_v22 = vld [vmem:[#allocation5 + $0x1f8] sm:$0xff]  ;;  %v522_v32 = vld [vmem:[#allocation5 + $0x7a0] sm:$0xff]  ;;  %v483_v41 = vld [vmem:[#allocation5 + $0x668] sm:$0xff] }
  0x50   : > { %900 = vmatpush.msrb.mxu1 %v360_v63  ;;  %865 = vmatmul.f32.vlgmr.msra.gmra.mxu2 %v2350_v1  ;;  %v321_v26 = vld [vmem:[#allocation5 + $0x158] sm:$0xff]  ;;  %v602_v35 = vld [vmem:[#allocation5 + $0xa20] sm:$0xff]  ;;  %v683_v42 = vld [vmem:[#allocation5 + $0xca8] sm:$0xf] }
  0x51   : > { %935 = vmatpush.msra.mxu3 %v461_v0  ;;  %1911 = vmatpush.msk.msrb.mxu2 %vm748_vm0, %v681_v2  ;;  %v301_v30 = vld [vmem:[#allocation5 + $0xb8] sm:$0xff]  ;;  %v502_v36 = vld [vmem:[#allocation5 + $0x700] sm:$0xff]  ;;  %v564_v43 = vld [vmem:[#allocation5 + $0x8f0] sm:$0xff] }
  0x52   : > { %1906 = vmatmul.msk.f32.vlgmr.msra.gmra.mxu1 %vm744_vm1, %v2345_v38  ;;  %823 = vmatpush.msra.mxu0 %v298_v7  ;;  %v281_v34 = vld [vmem:[#allocation5 + $0x18] sm:$0xff]  ;;  %v482_v40 = vld [vmem:[#allocation5 + $0x660] sm:$0xff]  ;;  %v463_v45 = vld [vmem:[#allocation5 + $0x5c8] sm:$0xff] }
  0x53   : > { %936 = vmatpush.msra.mxu3 %v441_v4  ;;  %901 = vmatpush.msrb.mxu1 %v340_v5  ;;  %v462_v44 = vld [vmem:[#allocation5 + $0x5c0] sm:$0xff]  ;;  %v663_v46 = vld [vmem:[#allocation5 + $0xc08] sm:$0xff]  ;;  %v544_v47 = vld [vmem:[#allocation5 + $0x850] sm:$0xff] }
  0x54   : > { %961 = vmatpush.msrb.mxu2 %v661_v6  ;;  %824 = vmatpush.msra.mxu0 %v278_v11  ;;  %v442_v48 = vld [vmem:[#allocation5 + $0x520] sm:$0xff]  ;;  %v443_v49 = vld [vmem:[#allocation5 + $0x528] sm:$0xff]  ;;  %v524_v51 = vld [vmem:[#allocation5 + $0x7b0] sm:$0xff] }
  0x55   : > { %937 = vmatpush.msra.mxu3 %v421_v8  ;;  %902 = vmatpush.msrb.mxu1 %v320_v9  ;;  %v643_v50 = vld [vmem:[#allocation5 + $0xb68] sm:$0xff]  ;;  %v422_v52 = vld [vmem:[#allocation5 + $0x480] sm:$0xff]  ;;  %v504_v55 = vld [vmem:[#allocation5 + $0x710] sm:$0xff] }
  0x56   : > { %962 = vmatpush.msrb.mxu2 %v641_v10  ;;  %1910 = vmatmul.msk.f32.vlgmr.msrb.gmra.mxu3 %vm744_vm1, %v2345_v38  ;;  %v423_v53 = vld [vmem:[#allocation5 + $0x488] sm:$0xff]  ;;  %v402_v56 = vld [vmem:[#allocation5 + $0x3e0] sm:$0xff]  ;;  %v484_v59 = vld [vmem:[#allocation5 + $0x670] sm:$0xff] }
  0x57   : > { %938 = vmatpush.msra.mxu3 %v401_v12  ;;  %825 = vmatmul.f32.vlgmr.msra.gmra.mxu0 %v2350_v1  ;;  %v623_v54 = vld [vmem:[#allocation5 + $0xac8] sm:$0xff]  ;;  %v382_v60 = vld [vmem:[#allocation5 + $0x340] sm:$0xff]  ;;  %v684_v62 = vld [vmem:[#allocation5 + $0xcb0] sm:$0xf] }
  0x58   : > { %903 = vmatpush.msrb.mxu1 %v300_v13  ;;  %963 = vmatpush.msrb.mxu2 %v621_v14  ;;  %v403_v57 = vld [vmem:[#allocation5 + $0x3e8] sm:$0xff]  ;;  %v464_v63 = vld [vmem:[#allocation5 + $0x5d0] sm:$0xff]  ;;  %v362_v0 = vld [vmem:[#allocation5 + $0x2a0] sm:$0xff] }
  0x59   : > { %939 = vmatpush.msra.mxu3 %v381_v15  ;;  %1913 = vmatpush.msk.msrb.mxu0 %vm748_vm0, %v682_v16  ;;  %v603_v58 = vld [vmem:[#allocation5 + $0xa28] sm:$0xff]  ;;  %v664_v3 = vld [vmem:[#allocation5 + $0xc10] sm:$0xff]  ;;  %v342_v5 = vld [vmem:[#allocation5 + $0x200] sm:$0xff] }
  0x5a   : > { %904 = vmatpush.msrb.mxu1 %v280_v17  ;;  %964 = vmatpush.msrb.mxu2 %v601_v18  ;;  %v383_v61 = vld [vmem:[#allocation5 + $0x348] sm:$0xff]  ;;  %v444_v4 = vld [vmem:[#allocation5 + $0x530] sm:$0xff]  ;;  %v322_v9 = vld [vmem:[#allocation5 + $0x160] sm:$0xff] }
  0x5b   : > { %905 = vmatmul.f32.vlgmr.msrb.gmra.mxu1 %v2350_v1  ;;  %940 = vmatpush.msra.mxu3 %v361_v19  ;;  %v363_v2 = vld [vmem:[#allocation5 + $0x2a8] sm:$0xff]  ;;  %v644_v7 = vld [vmem:[#allocation5 + $0xb70] sm:$0xff]  ;;  %v302_v13 = vld [vmem:[#allocation5 + $0xc0] sm:$0xff] }
  0x5c   : > { %969 = vmatpush.msra.mxu2 %v582_v20  ;;  %1009 = vmatpush.msra.mxu1 %v583_v21  ;;  %v343_v6 = vld [vmem:[#allocation5 + $0x208] sm:$0xff]  ;;  %v424_v8 = vld [vmem:[#allocation5 + $0x490] sm:$0xff]  ;;  %v282_v17 = vld [vmem:[#allocation5 + $0x20] sm:$0xff] }
  0x5d   : > { %941 = vmatpush.msra.mxu3 %v341_v22  ;;  %1001 = vmatpush.msrb.mxu0 %v662_v23  ;;  %v323_v10 = vld [vmem:[#allocation5 + $0x168] sm:$0xff]  ;;  %v624_v11 = vld [vmem:[#allocation5 + $0xad0] sm:$0xff]  ;;  %v685_v18 = vld [vmem:[#allocation5 + $0xcb8] sm:$0xf] }
  0x5e   : > { %970 = vmatpush.msra.mxu2 %v562_v24  ;;  %1010 = vmatpush.msra.mxu1 %v563_v25  ;;  %v404_v12 = vld [vmem:[#allocation5 + $0x3f0] sm:$0xff]  ;;  %v303_v14 = vld [vmem:[#allocation5 + $0xc8] sm:$0xff]  ;;  %v585_v21 = vld [vmem:[#allocation5 + $0x998] sm:$0xff] }
  0x5f   : > { %942 = vmatpush.msra.mxu3 %v321_v26  ;;  %1002 = vmatpush.msrb.mxu0 %v642_v27  ;;  %v604_v15 = vld [vmem:[#allocation5 + $0xa30] sm:$0xff]  ;;  %v283_v19 = vld [vmem:[#allocation5 + $0x28] sm:$0xff]  ;;  %v665_v22 = vld [vmem:[#allocation5 + $0xc18] sm:$0xff] }
  0x60   : > { %971 = vmatpush.msra.mxu2 %v542_v28  ;;  %1011 = vmatpush.msra.mxu1 %v543_v29  ;;  %v384_v16 = vld [vmem:[#allocation5 + $0x350] sm:$0xff]  ;;  %v586_v23 = vld [vmem:[#allocation5 + $0x9a0] sm:$0xff]  ;;  %v565_v25 = vld [vmem:[#allocation5 + $0x8f8] sm:$0xff] }
  0x61   : > { %943 = vmatpush.msra.mxu3 %v301_v30  ;;  %1003 = vmatpush.msrb.mxu0 %v622_v31  ;;  %v364_v20 = vld [vmem:[#allocation5 + $0x2b0] sm:$0xff]  ;;  %v645_v26 = vld [vmem:[#allocation5 + $0xb78] sm:$0xff]  ;;  %v566_v27 = vld [vmem:[#allocation5 + $0x900] sm:$0xff] }
  0x62   : > { %972 = vmatpush.msra.mxu2 %v522_v32  ;;  %1012 = vmatpush.msra.mxu1 %v523_v33  ;;  %v344_v24 = vld [vmem:[#allocation5 + $0x210] sm:$0xff]  ;;  %v545_v29 = vld [vmem:[#allocation5 + $0x858] sm:$0xff]  ;;  %v546_v31 = vld [vmem:[#allocation5 + $0x860] sm:$0xff] }
  0x63   : > { %944 = vmatpush.msra.mxu3 %v281_v34  ;;  %1004 = vmatpush.msrb.mxu0 %v602_v35  ;;  %v324_v28 = vld [vmem:[#allocation5 + $0x170] sm:$0xff]  ;;  %v625_v30 = vld [vmem:[#allocation5 + $0xad8] sm:$0xff]  ;;  %v526_v35 = vld [vmem:[#allocation5 + $0x7c0] sm:$0xff] }
  0x64   : > { %973 = vmatpush.msra.mxu2 %v502_v36  ;;  %1013 = vmatpush.msra.mxu1 %v503_v37  ;;  %v304_v32 = vld [vmem:[#allocation5 + $0xd0] sm:$0xff]  ;;  %v525_v33 = vld [vmem:[#allocation5 + $0x7b8] sm:$0xff]  ;;  %v686_v37 = vld [vmem:[#allocation5 + $0xcc0] sm:$0xf] }
  0x65   : > { %945 = vmatmul.f32.vlgmr.msra.gmra.mxu3 %v2350_v1  ;;  %1912 = vmatmul.msk.f32.vlgmr.msrb.gmra.mxu2 %vm744_vm1, %v2345_v38  ;;  %v605_v34 = vld [vmem:[#allocation5 + $0xa38] sm:$0xff]  ;;  %v284_v36 = vld [vmem:[#allocation5 + $0x30] sm:$0xff] }
  0x66   : > { %1049 = vmatpush.msrb.mxu3 %v584_v39  ;;  %974 = vmatpush.msra.mxu2 %v482_v40  ;;  %v505_v39 = vld [vmem:[#allocation5 + $0x718] sm:$0xff]  ;;  %v506_v40 = vld [vmem:[#allocation5 + $0x720] sm:$0xff] }
  0x67   : > { %1014 = vmatpush.msra.mxu1 %v483_v41  ;;  %1915 = vmatpush.msk.msra.mxu0 %vm748_vm0, %v683_v42  ;;  %v666_v41 = vld [vmem:[#allocation5 + $0xc20] sm:$0xff]  ;;  %v587_v42 = vld [vmem:[#allocation5 + $0x9a8] sm:$0xff] }
  0x68   : > { %1050 = vmatpush.msrb.mxu3 %v564_v43  ;;  %975 = vmatpush.msra.mxu2 %v462_v44  ;;  %v485_v43 = vld [vmem:[#allocation5 + $0x678] sm:$0xff]  ;;  %v486_v44 = vld [vmem:[#allocation5 + $0x680] sm:$0xff] }
  0x69   : > { %1015 = vmatpush.msra.mxu1 %v463_v45  ;;  %1041 = vmatpush.msra.mxu0 %v663_v46  ;;  %v646_v45 = vld [vmem:[#allocation5 + $0xb80] sm:$0xff]  ;;  %v567_v46 = vld [vmem:[#allocation5 + $0x908] sm:$0xff] }
  0x6a   : > { %1051 = vmatpush.msrb.mxu3 %v544_v47  ;;  %976 = vmatpush.msra.mxu2 %v442_v48  ;;  %v465_v47 = vld [vmem:[#allocation5 + $0x5d8] sm:$0xff]  ;;  %v466_v48 = vld [vmem:[#allocation5 + $0x5e0] sm:$0xff] }
  0x6b   : > { %1016 = vmatpush.msra.mxu1 %v443_v49  ;;  %1042 = vmatpush.msra.mxu0 %v643_v50  ;;  %v626_v49 = vld [vmem:[#allocation5 + $0xae0] sm:$0xff]  ;;  %v547_v50 = vld [vmem:[#allocation5 + $0x868] sm:$0xff] }
  0x6c   : > { %1052 = vmatpush.msrb.mxu3 %v524_v51  ;;  %977 = vmatpush.msra.mxu2 %v422_v52  ;;  %v445_v51 = vld [vmem:[#allocation5 + $0x538] sm:$0xff]  ;;  %v446_v52 = vld [vmem:[#allocation5 + $0x540] sm:$0xff] }
  0x6d   : > { %1017 = vmatpush.msra.mxu1 %v423_v53  ;;  %1043 = vmatpush.msra.mxu0 %v623_v54  ;;  %v606_v53 = vld [vmem:[#allocation5 + $0xa40] sm:$0xff]  ;;  %v527_v54 = vld [vmem:[#allocation5 + $0x7c8] sm:$0xff] }
  0x6e   : > { %1053 = vmatpush.msrb.mxu3 %v504_v55  ;;  %978 = vmatpush.msra.mxu2 %v402_v56  ;;  %v425_v55 = vld [vmem:[#allocation5 + $0x498] sm:$0xff]  ;;  %v426_v56 = vld [vmem:[#allocation5 + $0x4a0] sm:$0xff] }
  0x6f   : > { %1018 = vmatpush.msra.mxu1 %v403_v57  ;;  %1044 = vmatpush.msra.mxu0 %v603_v58  ;;  %v687_v57 = vld [vmem:[#allocation5 + $0xcc8] sm:$0xf] }
  0x70   : > { %1054 = vmatpush.msrb.mxu3 %v484_v59  ;;  %979 = vmatpush.msra.mxu2 %v382_v60  ;;  %v507_v58 = vld [vmem:[#allocation5 + $0x728] sm:$0xff]  ;;  %v405_v59 = vld [vmem:[#allocation5 + $0x3f8] sm:$0xff]  ;;  %v406_v60 = vld [vmem:[#allocation5 + $0x400] sm:$0xff] }
  0x71   : > { %1914 = vmatmul.msk.f32.vlgmr.msrb.gmra.mxu0 %vm744_vm1, %v2345_v38  ;;  %1019 = vmatpush.msra.mxu1 %v383_v61  ;;  %v667_v61 = vld [vmem:[#allocation5 + $0xc28] sm:$0xff] }
  0x72   : > { %1917 = vmatpush.msk.msrb.mxu0 %vm748_vm0, %v684_v62  ;;  %1055 = vmatpush.msrb.mxu3 %v464_v63  ;;  %v487_v62 = vld [vmem:[#allocation5 + $0x688] sm:$0xff]  ;;  %v385_v63 = vld [vmem:[#allocation5 + $0x358] sm:$0xff] }
  0x73   : > { %980 = vmatpush.msra.mxu2 %v362_v0  ;;  %1020 = vmatpush.msra.mxu1 %v363_v2  ;;  %v386_v0 = vld [vmem:[#allocation5 + $0x360] sm:$0xff]  ;;  %v647_v2 = vld [vmem:[#allocation5 + $0xb88] sm:$0xff] }
  0x74   : > { %1081 = vmatpush.msrb.mxu0 %v664_v3  ;;  %1056 = vmatpush.msrb.mxu3 %v444_v4  ;;  %v467_v3 = vld [vmem:[#allocation5 + $0x5e8] sm:$0xff]  ;;  %v365_v4 = vld [vmem:[#allocation5 + $0x2b8] sm:$0xff] }
  0x75   : > { %981 = vmatpush.msra.mxu2 %v342_v5  ;;  %1021 = vmatpush.msra.mxu1 %v343_v6  ;;  %v366_v5 = vld [vmem:[#allocation5 + $0x2c0] sm:$0xff]  ;;  %v627_v6 = vld [vmem:[#allocation5 + $0xae8] sm:$0xff] }
  0x76   : > { %1082 = vmatpush.msrb.mxu0 %v644_v7  ;;  %1057 = vmatpush.msrb.mxu3 %v424_v8  ;;  %v447_v7 = vld [vmem:[#allocation5 + $0x548] sm:$0xff]  ;;  %v345_v8 = vld [vmem:[#allocation5 + $0x218] sm:$0xff] }
  0x77   : > { %982 = vmatpush.msra.mxu2 %v322_v9  ;;  %1022 = vmatpush.msra.mxu1 %v323_v10  ;;  %v346_v9 = vld [vmem:[#allocation5 + $0x220] sm:$0xff]  ;;  %v607_v10 = vld [vmem:[#allocation5 + $0xa48] sm:$0xff] }
  0x78   : > { %1083 = vmatpush.msrb.mxu0 %v624_v11  ;;  %1058 = vmatpush.msrb.mxu3 %v404_v12  ;;  %v427_v11 = vld [vmem:[#allocation5 + $0x4a8] sm:$0xff]  ;;  %v688_v12 = vld [vmem:[#allocation5 + $0xcd0] sm:$0xf] }
  0x79   : > { %983 = vmatpush.msra.mxu2 %v302_v13  ;;  %1023 = vmatpush.msra.mxu1 %v303_v14  ;;  %v325_v13 = vld [vmem:[#allocation5 + $0x178] sm:$0xff]  ;;  %v326_v14 = vld [vmem:[#allocation5 + $0x180] sm:$0xff] }
  0x7a   : > { %1084 = vmatpush.msrb.mxu0 %v604_v15  ;;  %1059 = vmatpush.msrb.mxu3 %v384_v16  ;;  %v407_v15 = vld [vmem:[#allocation5 + $0x408] sm:$0xff]  ;;  %v668_v16 = vld [vmem:[#allocation5 + $0xc30] sm:$0xff] }
  0x7b   : > { %1916 = vmatmul.msk.f32.vlgmr.msra.gmra.mxu0 %vm744_vm1, %v2345_v38  ;;  %984 = vmatpush.msra.mxu2 %v282_v17  ;;  %v305_v17 = vld [vmem:[#allocation5 + $0xd8] sm:$0xff] }
  0x7c   : > { %1919 = vmatpush.msk.msra.mxu0 %vm748_vm0, %v685_v18  ;;  %1024 = vmatpush.msra.mxu1 %v283_v19  ;;  %v306_v18 = vld [vmem:[#allocation5 + $0xe0] sm:$0xff]  ;;  %v387_v19 = vld [vmem:[#allocation5 + $0x368] sm:$0xff] }
  0x7d   : > { %985 = vmatmul.f32.vlgmr.msra.gmra.mxu2 %v2350_v1  ;;  %1025 = vmatmul.f32.vlgmr.msra.gmra.mxu1 %v2350_v1 }
  0x7e   : > { %1060 = vmatpush.msrb.mxu3 %v364_v20  ;;  %1089 = vmatpush.msrb.mxu2 %v585_v21  ;;  %v648_v20 = vld [vmem:[#allocation5 + $0xb90] sm:$0xff]  ;;  %v285_v21 = vld [vmem:[#allocation5 + $0x38] sm:$0xff] }
  0x7f   : > { %1121 = vmatpush.msra.mxu0 %v665_v22  ;;  %1129 = vmatpush.msrb.mxu1 %v586_v23  ;;  %v286_v22 = vld [vmem:[#allocation5 + $0x40] sm:$0xff]  ;;  %v367_v23 = vld [vmem:[#allocation5 + $0x2c8] sm:$0xff] }
  0x80   : > { %1061 = vmatpush.msrb.mxu3 %v344_v24  ;;  %1090 = vmatpush.msrb.mxu2 %v565_v25  ;;  %v588_v24 = vld [vmem:[#allocation5 + $0x9b0] sm:$0xff] }
  0x81   : > { %1122 = vmatpush.msra.mxu0 %v645_v26  ;;  %1130 = vmatpush.msrb.mxu1 %v566_v27  ;;  %v628_v25 = vld [vmem:[#allocation5 + $0xaf0] sm:$0xff]  ;;  %v589_v26 = vld [vmem:[#allocation5 + $0x9b8] sm:$0xff]  ;;  %v347_v27 = vld [vmem:[#allocation5 + $0x228] sm:$0xff] }
  0x82   : > { %1062 = vmatpush.msrb.mxu3 %v324_v28  ;;  %1091 = vmatpush.msrb.mxu2 %v545_v29  ;;  %v568_v28 = vld [vmem:[#allocation5 + $0x910] sm:$0xff] }
  0x83   : > { %1123 = vmatpush.msra.mxu0 %v625_v30  ;;  %1131 = vmatpush.msrb.mxu1 %v546_v31  ;;  %v608_v29 = vld [vmem:[#allocation5 + $0xa50] sm:$0xff]  ;;  %v569_v30 = vld [vmem:[#allocation5 + $0x918] sm:$0xff] }
  0x84   : > { %1063 = vmatpush.msrb.mxu3 %v304_v32  ;;  %1092 = vmatpush.msrb.mxu2 %v525_v33  ;;  %v689_v31 = vld [vmem:[#allocation5 + $0xcd8] sm:$0xf]  ;;  %v327_v32 = vld [vmem:[#allocation5 + $0x188] sm:$0xff]  ;;  %v548_v33 = vld [vmem:[#allocation5 + $0x870] sm:$0xff] }
  0x85   : > { %1124 = vmatpush.msra.mxu0 %v605_v34  ;;  %1132 = vmatpush.msrb.mxu1 %v526_v35  ;;  %v549_v34 = vld [vmem:[#allocation5 + $0x878] sm:$0xff] }
  0x86   : > { %1918 = vmatmul.msk.f32.vlgmr.msrb.gmra.mxu0 %vm744_vm1, %v2345_v38  ;;  %1064 = vmatpush.msrb.mxu3 %v284_v36  ;;  %v669_v35 = vld [vmem:[#allocation5 + $0xc38] sm:$0xff]  ;;  %v307_v36 = vld [vmem:[#allocation5 + $0xe8] sm:$0xff] }
  0x87   : > { %1921 = vmatpush.msk.msrb.mxu0 %vm748_vm0, %v686_v37  ;;  %1093 = vmatpush.msrb.mxu2 %v505_v39  ;;  %v528_v37 = vld [vmem:[#allocation5 + $0x7d0] sm:$0xff]  ;;  %v529_v39 = vld [vmem:[#allocation5 + $0x7d8] sm:$0xff] }
  0x88   : > { %1133 = vmatpush.msrb.mxu1 %v506_v40  ;;  %1065 = vmatmul.f32.vlgmr.msrb.gmra.mxu3 %v2350_v1  ;;  %v649_v40 = vld [vmem:[#allocation5 + $0xb98] sm:$0xff] }
  0x89   : > { %1161 = vmatpush.msrb.mxu0 %v666_v41  ;;  %1169 = vmatpush.msra.mxu3 %v587_v42  ;;  %v287_v41 = vld [vmem:[#allocation5 + $0x48] sm:$0xff]  ;;  %v508_v42 = vld [vmem:[#allocation5 + $0x730] sm:$0xff] }
  0x8a   : > { %1094 = vmatpush.msrb.mxu2 %v485_v43  ;;  %1134 = vmatpush.msrb.mxu1 %v486_v44  ;;  %v509_v43 = vld [vmem:[#allocation5 + $0x738] sm:$0xff] }
  0x8b   : > { %1162 = vmatpush.msrb.mxu0 %v646_v45  ;;  %1170 = vmatpush.msra.mxu3 %v567_v46  ;;  %v629_v44 = vld [vmem:[#allocation5 + $0xaf8] sm:$0xff]  ;;  %v590_v45 = vld [vmem:[#allocation5 + $0x9c0] sm:$0xff]  ;;  %v488_v46 = vld [vmem:[#allocation5 + $0x690] sm:$0xff] }
  0x8c   : > { %1095 = vmatpush.msrb.mxu2 %v465_v47  ;;  %1135 = vmatpush.msrb.mxu1 %v466_v48  ;;  %v489_v47 = vld [vmem:[#allocation5 + $0x698] sm:$0xff] }
  0x8d   : > { %1163 = vmatpush.msrb.mxu0 %v626_v49  ;;  %1171 = vmatpush.msra.mxu3 %v547_v50  ;;  %v609_v48 = vld [vmem:[#allocation5 + $0xa58] sm:$0xff]  ;;  %v570_v49 = vld [vmem:[#allocation5 + $0x920] sm:$0xff]  ;;  %v468_v50 = vld [vmem:[#allocation5 + $0x5f0] sm:$0xff] }
  0x8e   : > { %1096 = vmatpush.msrb.mxu2 %v445_v51  ;;  %1136 = vmatpush.msrb.mxu1 %v446_v52  ;;  %v469_v51 = vld [vmem:[#allocation5 + $0x5f8] sm:$0xff]  ;;  %v690_v52 = vld [vmem:[#allocation5 + $0xce0] sm:$0xf] }
  0x8f   : > { %1164 = vmatpush.msrb.mxu0 %v606_v53  ;;  %1172 = vmatpush.msra.mxu3 %v527_v54  ;;  %v550_v53 = vld [vmem:[#allocation5 + $0x880] sm:$0xff]  ;;  %v448_v54 = vld [vmem:[#allocation5 + $0x550] sm:$0xff] }
  0x90   : > { %1097 = vmatpush.msrb.mxu2 %v425_v55  ;;  %1920 = vmatmul.msk.f32.vlgmr.msra.gmra.mxu0 %vm744_vm1, %v2345_v38  ;;  %v449_v55 = vld [vmem:[#allocation5 + $0x558] sm:$0xff] }
  0x91   : > { %1137 = vmatpush.msrb.mxu1 %v426_v56  ;;  %1923 = vmatpush.msk.msra.mxu0 %vm748_vm0, %v687_v57  ;;  %v670_v56 = vld [vmem:[#allocation5 + $0xc40] sm:$0xff] }
  0x92   : > { %1173 = vmatpush.msra.mxu3 %v507_v58  ;;  %1098 = vmatpush.msrb.mxu2 %v405_v59  ;;  %v530_v57 = vld [vmem:[#allocation5 + $0x7e0] sm:$0xff]  ;;  %v428_v58 = vld [vmem:[#allocation5 + $0x4b0] sm:$0xff]  ;;  %v429_v59 = vld [vmem:[#allocation5 + $0x4b8] sm:$0xff] }
  0x93   : > { %1138 = vmatpush.msrb.mxu1 %v406_v60  ;;  %1201 = vmatpush.msra.mxu0 %v667_v61  ;;  %v650_v60 = vld [vmem:[#allocation5 + $0xba0] sm:$0xff] }
  0x94   : > { %1174 = vmatpush.msra.mxu3 %v487_v62  ;;  %1099 = vmatpush.msrb.mxu2 %v385_v63  ;;  %v510_v61 = vld [vmem:[#allocation5 + $0x740] sm:$0xff]  ;;  %v408_v62 = vld [vmem:[#allocation5 + $0x410] sm:$0xff]  ;;  %v409_v63 = vld [vmem:[#allocation5 + $0x418] sm:$0xff] }
  0x95   : > { %1139 = vmatpush.msrb.mxu1 %v386_v0  ;;  %1202 = vmatpush.msra.mxu0 %v647_v2  ;;  %v630_v0 = vld [vmem:[#allocation5 + $0xb00] sm:$0xff] }
  0x96   : > { %1175 = vmatpush.msra.mxu3 %v467_v3  ;;  %1100 = vmatpush.msrb.mxu2 %v365_v4  ;;  %v490_v2 = vld [vmem:[#allocation5 + $0x6a0] sm:$0xff]  ;;  %v388_v3 = vld [vmem:[#allocation5 + $0x370] sm:$0xff]  ;;  %v389_v4 = vld [vmem:[#allocation5 + $0x378] sm:$0xff] }
  0x97   : > { %1140 = vmatpush.msrb.mxu1 %v366_v5  ;;  %1203 = vmatpush.msra.mxu0 %v627_v6  ;;  %v610_v5 = vld [vmem:[#allocation5 + $0xa60] sm:$0xff] }
  0x98   : > { %1176 = vmatpush.msra.mxu3 %v447_v7  ;;  %1101 = vmatpush.msrb.mxu2 %v345_v8  ;;  %v470_v6 = vld [vmem:[#allocation5 + $0x600] sm:$0xff]  ;;  %v368_v7 = vld [vmem:[#allocation5 + $0x2d0] sm:$0xff]  ;;  %v691_v8 = vld [vmem:[#allocation5 + $0xce8] sm:$0xf] }
  0x99   : > { %1141 = vmatpush.msrb.mxu1 %v346_v9  ;;  %1204 = vmatpush.msra.mxu0 %v607_v10  ;;  %v369_v9 = vld [vmem:[#allocation5 + $0x2d8] sm:$0xff]  ;;  %v450_v10 = vld [vmem:[#allocation5 + $0x560] sm:$0xff] }
  0x9a   : > { %1922 = vmatmul.msk.f32.vlgmr.msrb.gmra.mxu0 %vm744_vm1, %v2345_v38  ;;  %1177 = vmatpush.msra.mxu3 %v427_v11  ;;  %v348_v11 = vld [vmem:[#allocation5 + $0x230] sm:$0xff] }
  0x9b   : > { %1925 = vmatpush.msk.msrb.mxu0 %vm748_vm0, %v688_v12  ;;  %1102 = vmatpush.msrb.mxu2 %v325_v13  ;;  %v671_v12 = vld [vmem:[#allocation5 + $0xc48] sm:$0xff]  ;;  %v349_v13 = vld [vmem:[#allocation5 + $0x238] sm:$0xff] }
  0x9c   : > { %1142 = vmatpush.msrb.mxu1 %v326_v14  ;;  %1178 = vmatpush.msra.mxu3 %v407_v15  ;;  %v430_v14 = vld [vmem:[#allocation5 + $0x4c0] sm:$0xff]  ;;  %v328_v15 = vld [vmem:[#allocation5 + $0x190] sm:$0xff] }
  0x9d   : > { %1241 = vmatpush.msrb.mxu0 %v668_v16  ;;  %1103 = vmatpush.msrb.mxu2 %v305_v17  ;;  %v651_v16 = vld [vmem:[#allocation5 + $0xba8] sm:$0xff]  ;;  %v329_v17 = vld [vmem:[#allocation5 + $0x198] sm:$0xff] }
  0x9e   : > { %1143 = vmatpush.msrb.mxu1 %v306_v18  ;;  %1179 = vmatpush.msra.mxu3 %v387_v19  ;;  %v410_v18 = vld [vmem:[#allocation5 + $0x420] sm:$0xff]  ;;  %v308_v19 = vld [vmem:[#allocation5 + $0xf0] sm:$0xff] }
  0x9f   : > { %1242 = vmatpush.msrb.mxu0 %v648_v20  ;;  %1104 = vmatpush.msrb.mxu2 %v285_v21  ;;  %v631_v20 = vld [vmem:[#allocation5 + $0xb08] sm:$0xff]  ;;  %v309_v21 = vld [vmem:[#allocation5 + $0xf8] sm:$0xff] }
  0xa0   : > { %1144 = vmatpush.msrb.mxu1 %v286_v22  ;;  %1105 = vmatmul.f32.vlgmr.msrb.gmra.mxu2 %v2350_v1  ;;  %v390_v22 = vld [vmem:[#allocation5 + $0x380] sm:$0xff] }
  0xa1   : > { %1145 = vmatmul.f32.vlgmr.msrb.gmra.mxu1 %v2350_v1  ;;  %1180 = vmatpush.msra.mxu3 %v367_v23  ;;  %v288_v23 = vld [vmem:[#allocation5 + $0x50] sm:$0xff] }
  0xa2   : > { %1209 = vmatpush.msra.mxu2 %v588_v24  ;;  %1243 = vmatpush.msrb.mxu0 %v628_v25  ;;  %v611_v24 = vld [vmem:[#allocation5 + $0xa68] sm:$0xff]  ;;  %v289_v25 = vld [vmem:[#allocation5 + $0x58] sm:$0xff] }
  0xa3   : > { %1249 = vmatpush.msra.mxu1 %v589_v26  ;;  %1181 = vmatpush.msra.mxu3 %v347_v27  ;;  %v692_v26 = vld [vmem:[#allocation5 + $0xcf0] sm:$0xf]  ;;  %v370_v27 = vld [vmem:[#allocation5 + $0x2e0] sm:$0xff] }
  0xa4   : > { %1210 = vmatpush.msra.mxu2 %v568_v28  ;;  %1244 = vmatpush.msrb.mxu0 %v608_v29  ;;  %v591_v28 = vld [vmem:[#allocation5 + $0x9c8] sm:$0xff]  ;;  %v592_v29 = vld [vmem:[#allocation5 + $0x9d0] sm:$0xff] }
  0xa5   : > { %1250 = vmatpush.msra.mxu1 %v569_v30  ;;  %1924 = vmatmul.msk.f32.vlgmr.msra.gmra.mxu0 %vm744_vm1, %v2345_v38  ;;  %v672_v30 = vld [vmem:[#allocation5 + $0xc50] sm:$0xff] }
  0xa6   : > { %1927 = vmatpush.msk.msra.mxu0 %vm748_vm0, %v689_v31  ;;  %1182 = vmatpush.msra.mxu3 %v327_v32  ;;  %v350_v31 = vld [vmem:[#allocation5 + $0x240] sm:$0xff]  ;;  %v571_v32 = vld [vmem:[#allocation5 + $0x928] sm:$0xff] }
  0xa7   : > { %1211 = vmatpush.msra.mxu2 %v548_v33  ;;  %1251 = vmatpush.msra.mxu1 %v549_v34  ;;  %v572_v33 = vld [vmem:[#allocation5 + $0x930] sm:$0xff] }
  0xa8   : > { %1281 = vmatpush.msra.mxu0 %v669_v35  ;;  %1183 = vmatpush.msra.mxu3 %v307_v36  ;;  %v652_v34 = vld [vmem:[#allocation5 + $0xbb0] sm:$0xff]  ;;  %v330_v35 = vld [vmem:[#allocation5 + $0x1a0] sm:$0xff]  ;;  %v551_v36 = vld [vmem:[#allocation5 + $0x888] sm:$0xff] }
  0xa9   : > { %1212 = vmatpush.msra.mxu2 %v528_v37  ;;  %1252 = vmatpush.msra.mxu1 %v529_v39  ;;  %v632_v37 = vld [vmem:[#allocation5 + $0xb10] sm:$0xff]  ;;  %v310_v39 = vld [vmem:[#allocation5 + $0x100] sm:$0xff] }
  0xaa   : > { %1282 = vmatpush.msra.mxu0 %v649_v40  ;;  %1184 = vmatpush.msra.mxu3 %v287_v41  ;;  %v531_v40 = vld [vmem:[#allocation5 + $0x7e8] sm:$0xff]  ;;  %v532_v41 = vld [vmem:[#allocation5 + $0x7f0] sm:$0xff] }
  0xab   : > { %1213 = vmatpush.msra.mxu2 %v508_v42  ;;  %1253 = vmatpush.msra.mxu1 %v509_v43  ;;  %v612_v42 = vld [vmem:[#allocation5 + $0xa70] sm:$0xff]  ;;  %v290_v43 = vld [vmem:[#allocation5 + $0x60] sm:$0xff] }
  0xac   : > { %1185 = vmatmul.f32.vlgmr.msra.gmra.mxu3 %v2350_v1  ;;  %1283 = vmatpush.msra.mxu0 %v629_v44  ;;  %v511_v44 = vld [vmem:[#allocation5 + $0x748] sm:$0xff] }
  0xad   : > { %1289 = vmatpush.msrb.mxu3 %v590_v45  ;;  %1214 = vmatpush.msra.mxu2 %v488_v46  ;;  %v512_v45 = vld [vmem:[#allocation5 + $0x750] sm:$0xff]  ;;  %v693_v46 = vld [vmem:[#allocation5 + $0xcf8] sm:$0xf] }
  0xae   : > { %1254 = vmatpush.msra.mxu1 %v489_v47  ;;  %1284 = vmatpush.msra.mxu0 %v609_v48  ;;  %v593_v47 = vld [vmem:[#allocation5 + $0x9d8] sm:$0xff]  ;;  %v491_v48 = vld [vmem:[#allocation5 + $0x6a8] sm:$0xff] }
  0xaf   : > { %1290 = vmatpush.msrb.mxu3 %v570_v49  ;;  %1215 = vmatpush.msra.mxu2 %v468_v50  ;;  %v2401_v49 = vld [vmem:[%s2331_s19 + $0x8] sm:$0xff]  ;;  %v492_v50 = vld [vmem:[#allocation5 + $0x6b0] sm:$0xff] }
  0xb0   : > { %1926 = vmatmul.msk.f32.vlgmr.msrb.gmra.mxu0 %vm744_vm1, %v2345_v38  ;;  %1255 = vmatpush.msra.mxu1 %v469_v51  ;;  %v673_v51 = vld [vmem:[#allocation5 + $0xc58] sm:$0xff] }
  0xb1   : > { %1929 = vmatpush.msk.msrb.mxu0 %vm748_vm0, %v690_v52  ;;  %1291 = vmatpush.msrb.mxu3 %v550_v53  ;;  %v573_v52 = vld [vmem:[#allocation5 + $0x938] sm:$0xff]  ;;  %v471_v53 = vld [vmem:[#allocation5 + $0x608] sm:$0xff] }
  0xb2   : > { %1216 = vmatpush.msra.mxu2 %v448_v54  ;;  %1256 = vmatpush.msra.mxu1 %v449_v55  ;;  %v472_v54 = vld [vmem:[#allocation5 + $0x610] sm:$0xff]  ;;  %v653_v55 = vld [vmem:[#allocation5 + $0xbb8] sm:$0xff] }
  0xb3   : > { %1321 = vmatpush.msrb.mxu0 %v670_v56  ;;  %1292 = vmatpush.msrb.mxu3 %v530_v57  ;;  %v553_v56 = vld [vmem:[#allocation5 + $0x898] sm:$0xff]  ;;  %v451_v57 = vld [vmem:[#allocation5 + $0x568] sm:$0xff] }
  0xb4   : > { %1217 = vmatpush.msra.mxu2 %v428_v58  ;;  %1257 = vmatpush.msra.mxu1 %v429_v59  ;;  %v452_v58 = vld [vmem:[#allocation5 + $0x570] sm:$0xff]  ;;  %v633_v59 = vld [vmem:[#allocation5 + $0xb18] sm:$0xff] }
  0xb5   : > { %1322 = vmatpush.msrb.mxu0 %v650_v60  ;;  %1293 = vmatpush.msrb.mxu3 %v510_v61  ;;  %v533_v60 = vld [vmem:[#allocation5 + $0x7f8] sm:$0xff]  ;;  %v431_v61 = vld [vmem:[#allocation5 + $0x4c8] sm:$0xff] }
  0xb6   : > { %1218 = vmatpush.msra.mxu2 %v408_v62  ;;  %1258 = vmatpush.msra.mxu1 %v409_v63  ;;  %v613_v62 = vld [vmem:[#allocation5 + $0xa78] sm:$0xff] }
  0xb7   : > { %1323 = vmatpush.msrb.mxu0 %v630_v0  ;;  %1294 = vmatpush.msrb.mxu3 %v490_v2  ;;  %v513_v63 = vld [vmem:[#allocation5 + $0x758] sm:$0xff]  ;;  %v694_v0 = vld [vmem:[#allocation5 + $0xd00] sm:$0xf]  ;;  %v411_v2 = vld [vmem:[#allocation5 + $0x428] sm:$0xff] }
  0xb8   : > { %1219 = vmatpush.msra.mxu2 %v388_v3  ;;  %1259 = vmatpush.msra.mxu1 %v389_v4  ;;  %v412_v3 = vld [vmem:[#allocation5 + $0x430] sm:$0xff]  ;;  %v493_v4 = vld [vmem:[#allocation5 + $0x6b8] sm:$0xff] }
  0xb9   : > { %1324 = vmatpush.msrb.mxu0 %v610_v5  ;;  %1295 = vmatpush.msrb.mxu3 %v470_v6  ;;  %v674_v5 = vld [vmem:[#allocation5 + $0xc60] sm:$0xff]  ;;  %v391_v6 = vld [vmem:[#allocation5 + $0x388] sm:$0xff] }
  0xba   : > { %1928 = vmatmul.msk.f32.vlgmr.msra.gmra.mxu0 %vm744_vm1, %v2345_v38  ;;  %1220 = vmatpush.msra.mxu2 %v368_v7  ;;  %v392_v7 = vld [vmem:[#allocation5 + $0x390] sm:$0xff] }
  0xbb   : > { %1931 = vmatpush.msk.msra.mxu0 %vm748_vm0, %v691_v8  ;;  %1260 = vmatpush.msra.mxu1 %v369_v9  ;;  %v473_v8 = vld [vmem:[#allocation5 + $0x618] sm:$0xff]  ;;  %v654_v9 = vld [vmem:[#allocation5 + $0xbc0] sm:$0xff] }
  0xbc   : > { %1296 = vmatpush.msrb.mxu3 %v450_v10  ;;  %1221 = vmatpush.msra.mxu2 %v348_v11  ;;  %v371_v10 = vld [vmem:[#allocation5 + $0x2e8] sm:$0xff]  ;;  %v372_v11 = vld [vmem:[#allocation5 + $0x2f0] sm:$0xff] }
  0xbd   : > { %1361 = vmatpush.msra.mxu0 %v671_v12  ;;  %1261 = vmatpush.msra.mxu1 %v349_v13  ;;  %v453_v12 = vld [vmem:[#allocation5 + $0x578] sm:$0xff]  ;;  %v634_v13 = vld [vmem:[#allocation5 + $0xb20] sm:$0xff] }
  0xbe   : > { %1297 = vmatpush.msrb.mxu3 %v430_v14  ;;  %1222 = vmatpush.msra.mxu2 %v328_v15  ;;  %v351_v14 = vld [vmem:[#allocation5 + $0x248] sm:$0xff] }
  0xbf   : > { %1362 = vmatpush.msra.mxu0 %v651_v16  ;;  %1262 = vmatpush.msra.mxu1 %v329_v17  ;;  %v352_v16 = vld [vmem:[#allocation5 + $0x250] sm:$0xff]  ;;  %v433_v17 = vld [vmem:[#allocation5 + $0x4d8] sm:$0xff] }
  0xc0   : > { %1298 = vmatpush.msrb.mxu3 %v410_v18  ;;  %1223 = vmatpush.msra.mxu2 %v308_v19  ;;  %v614_v18 = vld [vmem:[#allocation5 + $0xa80] sm:$0xff]  ;;  %v331_v19 = vld [vmem:[#allocation5 + $0x1a8] sm:$0xff] }
  0xc1   : > { %1363 = vmatpush.msra.mxu0 %v631_v20  ;;  %1263 = vmatpush.msra.mxu1 %v309_v21  ;;  %v332_v20 = vld [vmem:[#allocation5 + $0x1b0] sm:$0xff]  ;;  %v695_v21 = vld [vmem:[#allocation5 + $0xd08] sm:$0xf] }
  0xc2   : > { %1299 = vmatpush.msrb.mxu3 %v390_v22  ;;  %1224 = vmatpush.msra.mxu2 %v288_v23  ;;  %v413_v22 = vld [vmem:[#allocation5 + $0x438] sm:$0xff] }
  0xc3   : > { %1364 = vmatpush.msra.mxu0 %v611_v24  ;;  %1264 = vmatpush.msra.mxu1 %v289_v25  ;;  %v311_v24 = vld [vmem:[#allocation5 + $0x108] sm:$0xff]  ;;  %v312_v25 = vld [vmem:[#allocation5 + $0x110] sm:$0xff] }
  0xc4   : > { %1930 = vmatmul.msk.f32.vlgmr.msrb.gmra.mxu0 %vm744_vm1, %v2345_v38  ;;  %1225 = vmatmul.f32.vlgmr.msra.gmra.mxu2 %v2350_v1  ;;  %v552_v38 = vld [vmem:[#allocation5 + $0x890] sm:$0xff] }
  0xc5   : > { %1933 = vmatpush.msk.msrb.mxu0 %vm748_vm0, %v692_v26  ;;  %1265 = vmatmul.f32.vlgmr.msra.gmra.mxu1 %v2350_v1  ;;  %v675_v26 = vld [vmem:[#allocation5 + $0xc68] sm:$0xff] }
  0xc6   : > { %1300 = vmatpush.msrb.mxu3 %v370_v27  ;;  %1329 = vmatpush.msrb.mxu2 %v591_v28  ;;  %v2416_v27 = vld [vmem:[#allocation7] sm:$0xff]  ;;  %v393_v28 = vld [vmem:[#allocation5 + $0x398] sm:$0xff] }
  0xc7   : > { %1369 = vmatpush.msrb.mxu1 %v592_v29  ;;  %1401 = vmatpush.msrb.mxu0 %v672_v30  ;;  %v2410_v15 = vpop.f32.mrf.mxu3  ;;  %v291_v29 = vld [vmem:[#allocation5 + $0x68] sm:$0xff]  ;;  %v292_v30 = vld [vmem:[#allocation5 + $0x70] sm:$0xff] }
  0xc8   : > { %1301 = vmatpush.msrb.mxu3 %v350_v31  ;;  %1330 = vmatpush.msrb.mxu2 %v571_v32  ;;  %v655_v31 = vld [vmem:[#allocation5 + $0xbc8] sm:$0xff]  ;;  %v705_v32 = vperm.slane %v2416_v27, 1 }
  0xc9   : > { %1370 = vmatpush.msrb.mxu1 %v572_v33  ;;  %1402 = vmatpush.msrb.mxu0 %v652_v34  ;;  %v373_v33 = vld [vmem:[#allocation5 + $0x2f8] sm:$0xff] }
  0xca   : > { %1302 = vmatpush.msrb.mxu3 %v330_v35  ;;  %1331 = vmatpush.msrb.mxu2 %v551_v36  ;;  %v704_v35 = vperm.slane %v2416_v27, 0 }
  0xcb   : > { %1371 = vmatpush.msrb.mxu1 %v552_v38  ;;  %1403 = vmatpush.msrb.mxu0 %v632_v37  ;;  %v594_v38 = vld [vmem:[#allocation5 + $0x9e0] sm:$0xff]  ;;  %v595_v37 = vld [vmem:[#allocation5 + $0x9e8] sm:$0xff] }
  0xcc   : > { %1303 = vmatpush.msrb.mxu3 %v310_v39  ;;  %1332 = vmatpush.msrb.mxu2 %v531_v40  ;;  %v2424_v40 = vld [vmem:[%s2331_s19] sm:$0xff]  ;;  %s275_s19 = scalar_lea.vmem %s2592_s5, %s1904_s14 }
  0xcd   : > { %1372 = vmatpush.msrb.mxu1 %v532_v41  ;;  %1404 = vmatpush.msrb.mxu0 %v612_v42  ;;  %v635_v41 = vld [vmem:[#allocation5 + $0xb28] sm:$0xff]  ;;  %v353_v42 = vld [vmem:[#allocation5 + $0x258] sm:$0xff] }
  0xce   : > { %1304 = vmatpush.msrb.mxu3 %v290_v43  ;;  %1333 = vmatpush.msrb.mxu2 %v511_v44  ;;  %v574_v43 = vld [vmem:[#allocation5 + $0x940] sm:$0xff]  ;;  %v575_v44 = vld [vmem:[#allocation5 + $0x948] sm:$0xff] }
  0xcf   : > { %1932 = vmatmul.msk.f32.vlgmr.msra.gmra.mxu0 %vm744_vm1, %v2401_v49  ;;  %1373 = vmatpush.msrb.mxu1 %v512_v45  ;;  %v2412_v23 = vpop.f32.mrf.mxu1 }
  0xd0   : > { %1935 = vmatpush.msk.msra.mxu0 %vm748_vm0, %v693_v46  ;;  %1305 = vmatmul.f32.vlgmr.msrb.gmra.mxu3 %v2350_v1  ;;  %v432_v1 = vld [vmem:[#allocation5 + $0x4d0] sm:$0xff]  ;;  %v615_v46 = vld [vmem:[#allocation5 + $0xa88] sm:$0xff] }
  0xd1   : > { %1409 = vmatpush.msra.mxu3 %v593_v47  ;;  %1334 = vmatpush.msrb.mxu2 %v491_v48  ;;  %v333_v47 = vld [vmem:[#allocation5 + $0x1b8] sm:$0xff] }
  0xd2   : > { %1374 = vmatpush.msrb.mxu1 %v492_v50  ;;  %1441 = vmatpush.msra.mxu0 %v673_v51  ;;  %v706_v50 = vperm.slane %v2416_v27, 2  ;;  %v554_v51 = vld [vmem:[#allocation5 + $0x8a0] sm:$0xff] }
  0xd3   : > { %1410 = vmatpush.msra.mxu3 %v573_v52  ;;  %1335 = vmatpush.msrb.mxu2 %v471_v53  ;;  %v866_v36 = vpop.f32.mrf.mxu2  ;;  %v555_v53 = vld [vmem:[#allocation5 + $0x8a8] sm:$0xff] }
  0xd4   : > { %1375 = vmatpush.msrb.mxu1 %v472_v54  ;;  %1442 = vmatpush.msra.mxu0 %v653_v55  ;;  %v826_v39 = vpop.f32.mrf.mxu0  ;;  %v867_v45 = vadd.f32 %v866_v36, %v705_v32  ;;  %v696_v54 = vld [vmem:[#allocation5 + $0xd10] sm:$0xf]  ;;  %v313_v55 = vld [vmem:[#allocation5 + $0x118] sm:$0xff] }
  0xd5   : > { %1411 = vmatpush.msra.mxu3 %v553_v56  ;;  %1336 = vmatpush.msrb.mxu2 %v451_v57  ;;  %v827_v48 = vadd.f32 %v826_v39, %v704_v35  ;;  %v534_v56 = vld [vmem:[#allocation5 + $0x800] sm:$0xff]  ;;  %v707_v57 = vperm.slane %v2416_v27, 3  ;;  %v415_v39 = vld [vmem:[#allocation5 + $0x448] sm:$0xff] }
  0xd6   : > { %1376 = vmatpush.msrb.mxu1 %v452_v58  ;;  %1443 = vmatpush.msra.mxu0 %v633_v59  ;;  %v2431_v58 = vadd.f32 %v2410_v15, %v867_v45  ;;  %v535_v59 = vld [vmem:[#allocation5 + $0x808] sm:$0xff]  ;;  %v576_v15 = vld [vmem:[#allocation5 + $0x950] sm:$0xff]  ;;  %v537_v45 = vld [vmem:[#allocation5 + $0x818] sm:$0xff] }
  0xd7   : > { %1412 = vmatpush.msra.mxu3 %v533_v60  ;;  %1337 = vmatpush.msrb.mxu2 %v431_v61  ;;  %v676_v60 = vld [vmem:[#allocation5 + $0xc70] sm:$0xff] }
  0xd8   : > { %1377 = vmatpush.msrb.mxu1 %v432_v1  ;;  %1444 = vmatpush.msra.mxu0 %v613_v62  ;;  %v906_v52 = vpop.f32.mrf.mxu1  ;;  %v2436_v1 = vadd.f32 %v2412_v23, %v827_v48  ;;  %v708_v48 = vperm.slane %v2416_v27, 4  ;;  %vm1610_vm3 = vcmp.gt.f32.partialorder %v2431_v58, 0.0 }
  0xd9   : > { %1934 = vmatmul.msk.f32.vlgmr.msrb.gmra.mxu0 %vm744_vm1, %v2401_v49  ;;  %1413 = vmatpush.msra.mxu3 %v513_v63  ;;  %v2420_v34 = vpop.f32.mrf.mxu3  ;;  %v907_v62 = vadd.f32 %v906_v52, %v706_v50  ;;  %v293_v63 = vld [vmem:[#allocation5 + $0x78] sm:$0xff]  ;;  %v476_v50 = vld [vmem:[#allocation5 + $0x630] sm:$0xff] }
  0xda   : > { %1937 = vmatpush.msk.msrb.mxu0 %vm748_vm0, %v694_v0  ;;  %1338 = vmatpush.msrb.mxu2 %v411_v2  ;;  %v514_v0 = vld [vmem:[#allocation5 + $0x760] sm:$0xff]  ;;  %v515_v2 = vld [vmem:[#allocation5 + $0x768] sm:$0xff]  ;;  %v517_v52 = vld [vmem:[#allocation5 + $0x778] sm:$0xff]  ;;  %vm1609_vm2 = vcmp.gt.f32.partialorder %v2436_v1, 0.0 }
  0xdb   : > { %1378 = vmatpush.msrb.mxu1 %v412_v3  ;;  %1414 = vmatpush.msra.mxu3 %v493_v4  ;;  %v656_v3 = vld [vmem:[#allocation5 + $0xbd0] sm:$0xff] }
  0xdc   : > { %1481 = vmatpush.msrb.mxu0 %v674_v5  ;;  %1339 = vmatpush.msrb.mxu2 %v391_v6  ;;  %v494_v5 = vld [vmem:[#allocation5 + $0x6c0] sm:$0xff] }
  0xdd   : > { %1379 = vmatpush.msrb.mxu1 %v392_v7  ;;  %1415 = vmatpush.msra.mxu3 %v473_v8  ;;  %v1630_v7 = vmin.f32 %v2431_v58, 0.0  ;;  %v596_v8 = vld [vmem:[#allocation5 + $0x9f0] sm:$0xff] }
  0xde   : > { %1482 = vmatpush.msrb.mxu0 %v654_v9  ;;  %1340 = vmatpush.msrb.mxu2 %v371_v10  ;;  %v495_v9 = vld [vmem:[#allocation5 + $0x6c8] sm:$0xff] }
  0xdf   : > { %1380 = vmatpush.msrb.mxu1 %v372_v11  ;;  %1416 = vmatpush.msra.mxu3 %v453_v12  ;;  %v1629_v11 = vmin.f32 %v2436_v1, 0.0  ;;  %v2444_v12 = vadd.f32 %v2420_v34, %v907_v62  ;;  %v414_v34 = vld [vmem:[#allocation5 + $0x440] sm:$0xff]  ;;  %v355_v62 = vld [vmem:[#allocation5 + $0x268] sm:$0xff] }
  0xe0   : > { %1483 = vmatpush.msrb.mxu0 %v634_v13  ;;  %1341 = vmatpush.msrb.mxu2 %v351_v14  ;;  %v636_v13 = vld [vmem:[#allocation5 + $0xb30] sm:$0xff]  ;;  %v474_v14 = vld [vmem:[#allocation5 + $0x620] sm:$0xff] }
  0xe1   : > { %1381 = vmatpush.msrb.mxu1 %v352_v16  ;;  %1417 = vmatpush.msra.mxu3 %v433_v17  ;;  %v475_v16 = vld [vmem:[#allocation5 + $0x628] sm:$0xff]  ;;  %v616_v17 = vld [vmem:[#allocation5 + $0xa90] sm:$0xff]  ;;  %v1631_v23 = vmin.f32 %v2444_v12, 0.0  ;;  %vm1611_vm4 = vcmp.gt.f32.partialorder %v2444_v12, 0.0 }
  0xe2   : > { %1484 = vmatpush.msrb.mxu0 %v614_v18  ;;  %1342 = vmatpush.msrb.mxu2 %v331_v19  ;;  %v454_v18 = vld [vmem:[#allocation5 + $0x580] sm:$0xff] }
  0xe3   : > { %1382 = vmatpush.msrb.mxu1 %v332_v20  ;;  %1936 = vmatmul.msk.f32.vlgmr.msra.gmra.mxu0 %vm744_vm1, %v2401_v49  ;;  %v1651_v20 = vmul.f32 1.442695, %v1630_v7 }
  0xe4   : > { %1939 = vmatpush.msk.msra.mxu0 %vm748_vm0, %v695_v21  ;;  %1418 = vmatpush.msra.mxu3 %v413_v22  ;;  %v556_v21 = vld [vmem:[#allocation5 + $0x8b0] sm:$0xff]  ;;  %v1649_v22 = vmul.f32 1.442695, %v1629_v11  ;;  %v314_v11 = vld [vmem:[#allocation5 + $0x120] sm:$0xff] }
  0xe5   : > { %1343 = vmatpush.msrb.mxu2 %v311_v24  ;;  %1383 = vmatpush.msrb.mxu1 %v312_v25  ;;  %v597_v24 = vld [vmem:[#allocation5 + $0x9f8] sm:$0xff]  ;;  %v455_v25 = vld [vmem:[#allocation5 + $0x588] sm:$0xff]  ;;  %2034 = vpow2.f32 %v1651_v20 }
  0xe6   : > { %1521 = vmatpush.msra.mxu0 %v675_v26  ;;  %1419 = vmatpush.msra.mxu3 %v393_v28  ;;  %v709_v26 = vperm.slane %v2416_v27, 5  ;;  %v536_v28 = vld [vmem:[#allocation5 + $0x810] sm:$0xff]  ;;  %2036 = vpow2.f32 %v1649_v22  ;;  %v437_v20 = vld [vmem:[#allocation5 + $0x4f8] sm:$0xff] }
  0xe7   : > { %1344 = vmatpush.msrb.mxu2 %v291_v29  ;;  %1384 = vmatpush.msrb.mxu1 %v292_v30  ;;  %v434_v29 = vld [vmem:[#allocation5 + $0x4e0] sm:$0xff]  ;;  %v577_v30 = vld [vmem:[#allocation5 + $0x958] sm:$0xff] }
  0xe8   : > { %1522 = vmatpush.msra.mxu0 %v655_v31  ;;  %1345 = vmatmul.f32.vlgmr.msrb.gmra.mxu2 %v2424_v40  ;;  %v946_v61 = vpop.f32.mrf.mxu3  ;;  %v966_v10 = vpop.f32.mrf.mxu2  ;;  %v435_v31 = vld [vmem:[#allocation5 + $0x4e8] sm:$0xff] }
  0xe9   : > { %1385 = vmatmul.f32.vlgmr.msrb.gmra.mxu1 %v2424_v40  ;;  %1420 = vmatpush.msra.mxu3 %v373_v33  ;;  %v947_v6 = vadd.f32 %v946_v61, %v707_v57  ;;  %v516_v33 = vld [vmem:[#allocation5 + $0x770] sm:$0xff]  ;;  %v354_v57 = vld [vmem:[#allocation5 + $0x260] sm:$0xff]  ;;  %v497_v61 = vld [vmem:[#allocation5 + $0x6d8] sm:$0xff] }
  0xea   : > { %1449 = vmatpush.msra.mxu2 %v594_v38  ;;  %1489 = vmatpush.msra.mxu1 %v595_v37  ;;  %v1653_v38 = vmul.f32 1.442695, %v1631_v23  ;;  %v557_v37 = vld [vmem:[#allocation5 + $0x8b8] sm:$0xff] }
  0xeb   : > { %1523 = vmatpush.msra.mxu0 %v635_v41  ;;  %1421 = vmatpush.msra.mxu3 %v353_v42  ;;  %v2447_v19 = vadd.f32 %v966_v10, %v947_v6  ;;  %v496_v42 = vld [vmem:[#allocation5 + $0x6d0] sm:$0xff] }
  0xec   : > { %1450 = vmatpush.msra.mxu2 %v574_v43  ;;  %1490 = vmatpush.msra.mxu1 %v575_v44  ;;  %v394_v43 = vld [vmem:[#allocation5 + $0x3a0] sm:$0xff]  ;;  %2038 = vpow2.f32 %v1653_v38  ;;  %v416_v10 = vld [vmem:[#allocation5 + $0x450] sm:$0xff] }
  0xed   : > { %1524 = vmatpush.msra.mxu0 %v615_v46  ;;  %1422 = vmatpush.msra.mxu3 %v333_v47  ;;  %v1632_v32 = vmin.f32 %v2447_v19, 0.0  ;;  %v395_v46 = vld [vmem:[#allocation5 + $0x3a8] sm:$0xff]  ;;  %vm1612_vm5 = vcmp.gt.f32.partialorder %v2447_v19, 0.0 }
  0xee   : > { %1451 = vmatpush.msra.mxu2 %v554_v51  ;;  %1938 = vmatmul.msk.f32.vlgmr.msrb.gmra.mxu0 %vm744_vm1, %v2401_v49  ;;  %v2439_v4 = vpop.f32.mrf.mxu0  ;;  %v374_v51 = vld [vmem:[#allocation5 + $0x300] sm:$0xff] }
  0xef   : > { %1491 = vmatpush.msra.mxu1 %v555_v53  ;;  %1941 = vmatpush.msk.msrb.mxu0 %vm748_vm0, %v696_v54  ;;  %v1655_v44 = vmul.f32 1.442695, %v1632_v32  ;;  %v375_v53 = vld [vmem:[#allocation5 + $0x308] sm:$0xff] }
  0xf0   : > { %1423 = vmatpush.msra.mxu3 %v313_v55  ;;  %1452 = vmatpush.msra.mxu2 %v534_v56  ;;  %v2035_v55 = vpop.eup %2034  ;;  %v456_v56 = vld [vmem:[#allocation5 + $0x590] sm:$0xff] }
  0xf1   : > { %1492 = vmatpush.msra.mxu1 %v535_v59  ;;  %1561 = vmatpush.msrb.mxu0 %v676_v60  ;;  %v2037_v60 = vpop.eup %2036  ;;  %2040 = vpow2.f32 %v1655_v44 }
  0xf2   : > { %1424 = vmatpush.msra.mxu3 %v293_v63  ;;  %1453 = vmatpush.msra.mxu2 %v514_v0  ;;  %v436_v0 = vld [vmem:[#allocation5 + $0x4f0] sm:$0xff] }
  0xf3   : > { %1493 = vmatpush.msra.mxu1 %v515_v2  ;;  %1562 = vmatpush.msrb.mxu0 %v656_v3  ;;  %v334_v2 = vld [vmem:[#allocation5 + $0x1c0] sm:$0xff]  ;;  %v477_v3 = vld [vmem:[#allocation5 + $0x638] sm:$0xff] }
  0xf4   : > { %1425 = vmatmul.f32.vlgmr.msra.gmra.mxu3 %v2424_v40  ;;  %1454 = vmatpush.msra.mxu2 %v494_v5  ;;  %v335_v5 = vld [vmem:[#allocation5 + $0x1c8] sm:$0xff] }
  0xf5   : > { %1529 = vmatpush.msrb.mxu3 %v596_v8  ;;  %1494 = vmatpush.msra.mxu1 %v495_v9  ;;  %v1945_v8 = vadd.f32 -1.0, %v2037_v60  ;;  %v1946_v9 = vadd.f32 -1.0, %v2035_v55  ;;  %v337_v55 = vld [vmem:[#allocation5 + $0x1d8] sm:$0xff] }
  0xf6   : > { %1563 = vmatpush.msrb.mxu0 %v636_v13  ;;  %1455 = vmatpush.msra.mxu2 %v474_v14  ;;  %v2039_v13 = vpop.eup %2038  ;;  %v457_v14 = vld [vmem:[#allocation5 + $0x598] sm:$0xff] }
  0xf7   : > { %1530 = vmatpush.msrb.mxu3 %v576_v15  ;;  %1495 = vmatpush.msra.mxu1 %v475_v16  ;;  %v315_v15 = vld [vmem:[#allocation5 + $0x128] sm:$0xff]  ;;  %v1709_v23 = vsel %vm1609_vm2, %v2436_v1, %v1945_v8  ;;  %v397_v1 = vld [vmem:[#allocation5 + $0x3b8] sm:$0xff] }
  0xf8   : > { %1564 = vmatpush.msrb.mxu0 %v616_v17  ;;  %1456 = vmatpush.msra.mxu2 %v454_v18  ;;  %v1046_v36 = vpop.f32.mrf.mxu0  ;;  %v396_v17 = vld [vmem:[#allocation5 + $0x3b0] sm:$0xff]  ;;  %v2041_v18 = vpop.eup %2040 }
  0xf9   : > { %1940 = vmatmul.msk.f32.vlgmr.msra.gmra.mxu0 %vm744_vm1, %v2401_v49  ;;  %1531 = vmatpush.msrb.mxu3 %v556_v21  ;;  %v295_v21 = vld [vmem:[#allocation5 + $0x88] sm:$0xff] }
  0xfa   : > { %1569 = vmatpush.msra.mxu0 %v597_v24  ;;  %1496 = vmatpush.msra.mxu1 %v455_v25  ;;  %v1026_v35 = vpop.f32.mrf.mxu1  ;;  %v1710_v24 = vsel %vm1610_vm3, %v2431_v58, %v1946_v9  ;;  %v1947_v25 = vadd.f32 -1.0, %v2039_v13  ;;  %v356_v58 = vld [vmem:[#allocation5 + $0x270] sm:$0xff]  ;;  %v711_v13 = vperm.slane %v2416_v27, 7 }
  0xfb   : > { %1532 = vmatpush.msrb.mxu3 %v536_v28  ;;  %1457 = vmatpush.msra.mxu2 %v434_v29  ;;  %v1027_v41 = vadd.f32 %v1026_v35, %v709_v26  ;;  %v710_v26 = vperm.slane %v2416_v27, 6  ;;  %v376_v28 = vld [vmem:[#allocation5 + $0x310] sm:$0xff]  ;;  %v417_v29 = vld [vmem:[#allocation5 + $0x458] sm:$0xff]  ;;  %v1729_v32 = vmax.f32 %v1709_v23, %v1710_v24 }
  0xfc   : > { %1570 = vmatpush.msra.mxu0 %v577_v30  ;;  %1497 = vmatpush.msra.mxu1 %v435_v31  ;;  %v1948_v30 = vadd.f32 -1.0, %v2041_v18  ;;  %v697_v31 = vld [vmem:[#allocation5 + $0xd18] sm:$0xf] }
  0xfd   : > { %1533 = vmatpush.msrb.mxu3 %v516_v33  ;;  %1458 = vmatpush.msra.mxu2 %v414_v34  ;;  %v2454_v47 = vadd.f32 %v1046_v36, %v1027_v41  ;;  %v1711_v34 = vsel %vm1611_vm4, %v2444_v12, %v1947_v25  ;;  %v677_v35 = vld [vmem:[#allocation5 + $0xc78] sm:$0xff] }
  0xfe   : > { %1571 = vmatpush.msra.mxu0 %v557_v37  ;;  %1498 = vmatpush.msra.mxu1 %v415_v39  ;;  %v336_v39 = vld [vmem:[#allocation5 + $0x1d0] sm:$0xff]  ;;  %v377_v41 = vld [vmem:[#allocation5 + $0x318] sm:$0xff] }
  0xff   : > { %1534 = vmatpush.msrb.mxu3 %v496_v42  ;;  %1459 = vmatpush.msra.mxu2 %v394_v43  ;;  %v1634_v54 = vmin.f32 %v2454_v47, 0.0  ;;  %v1712_v42 = vsel %vm1612_vm5, %v2447_v19, %v1948_v30  ;;  %v657_v12 = vld [vmem:[#allocation5 + $0xbd8] sm:$0xff]  ;;  %v296_v19 = vld [vmem:[#allocation5 + $0x90] sm:$0xff]  ;;  %vm1614_vm7 = vcmp.gt.f32.partialorder %v2454_v47, 0.0 }
 0x100   : > { %1572 = vmatpush.msra.mxu0 %v537_v45  ;;  %1499 = vmatpush.msra.mxu1 %v395_v46  ;;  %v986_v59 = vpop.f32.mrf.mxu2  ;;  %v1730_v45 = vmax.f32 %v1729_v32, %v1711_v34  ;;  %v316_v46 = vld [vmem:[#allocation5 + $0x130] sm:$0xff] }
 0x101   : > { %1535 = vmatpush.msrb.mxu3 %v476_v50  ;;  %1460 = vmatpush.msra.mxu2 %v374_v51  ;;  %v987_v63 = vadd.f32 %v986_v59, %v708_v48  ;;  %v1659_v6 = vmul.f32 1.442695, %v1634_v54  ;;  %v357_v48 = vld [vmem:[#allocation5 + $0x278] sm:$0xff] }
 0x102   : > { %1573 = vmatpush.msra.mxu0 %v517_v52  ;;  %1500 = vmatpush.msra.mxu1 %v375_v53  ;;  %v637_v51 = vld [vmem:[#allocation5 + $0xb38] sm:$0xff]  ;;  %v1731_v54 = vmax.f32 %v1730_v45, %v1712_v42 }
 0x103   : > { %1536 = vmatpush.msrb.mxu3 %v456_v56  ;;  %1461 = vmatpush.msra.mxu2 %v354_v57  ;;  %v2459_v7 = vadd.f32 %v2439_v4, %v987_v63  ;;  %v294_v4 = vld [vmem:[#allocation5 + $0x80] sm:$0xff]  ;;  %2042 = vpow2.f32 %v1659_v6  ;;  %v1086_v36 = vpop.f32.mrf.mxu0  ;;  %v617_v57 = vld [vmem:[#allocation5 + $0xa98] sm:$0xff] }
 0x104   : > { %1574 = vmatpush.msra.mxu0 %v497_v61  ;;  %1501 = vmatpush.msra.mxu1 %v355_v62  ;;  %v317_v61 = vld [vmem:[#allocation5 + $0x138] sm:$0xff] }
 0x105   : > { %1537 = vmatpush.msrb.mxu3 %v436_v0  ;;  %1462 = vmatpush.msra.mxu2 %v334_v2  ;;  %v1633_v16 = vmin.f32 %v2459_v7, 0.0  ;;  %vm1613_vm6 = vcmp.gt.f32.partialorder %v2459_v7, 0.0  ;;  %v297_v63 = vld [vmem:[#allocation5 + $0x98] sm:$0xff] }
 0x106   : > { %1575 = vmatpush.msra.mxu0 %v477_v3  ;;  %1502 = vmatpush.msra.mxu1 %v335_v5  ;;  %v2489_v3 = vld [vmem:[#allocation7 + $0x8] sm:$0xff] }
 0x107   : > { %1538 = vmatpush.msrb.mxu3 %v416_v10  ;;  %1463 = vmatpush.msra.mxu2 %v314_v11  ;;  %v1657_v22 = vmul.f32 1.442695, %v1633_v16  ;;  %v712_v6 = vperm.slane %v2489_v3, 0 }
 0x108   : > { %1576 = vmatpush.msra.mxu0 %v457_v14  ;;  %1503 = vmatpush.msra.mxu1 %v315_v15 }
 0x109   : > { %1539 = vmatpush.msrb.mxu3 %v396_v17  ;;  %1464 = vmatpush.msra.mxu2 %v294_v4  ;;  %2044 = vpow2.f32 %v1657_v22  ;;  %v2043_v37 = vpop.eup %2042 }
 0x10a   : > { %1577 = vmatpush.msra.mxu0 %v437_v20  ;;  %1504 = vmatpush.msra.mxu1 %v295_v21  ;;  %v1950_v50 = vadd.f32 -1.0, %v2043_v37 }
 0x10b   : > { %1465 = vmatmul.f32.vlgmr.msra.gmra.mxu2 %v2424_v40  ;;  %1505 = vmatmul.f32.vlgmr.msra.gmra.mxu1 %v2424_v40  ;;  %v1066_v33 = vpop.f32.mrf.mxu3 }
 0x10c   : > { %1540 = vmatpush.msrb.mxu3 %v376_v28  ;;  %1578 = vmatpush.msra.mxu0 %v417_v29  ;;  %v1067_v38 = vadd.f32 %v1066_v33, %v710_v26  ;;  %v1714_v62 = vsel %vm1614_vm7, %v2454_v47, %v1950_v50 }
 0x10d   : > { %1943 = vmatpush.msk.msrb.mxu2 %vm748_vm0, %v697_v31  ;;  %1942 = vmatmul.msk.f32.vlgmr.msrb.gmra.mxu0 %vm744_vm1, %v2401_v49  ;;  %v1126_v2 = vpop.f32.mrf.mxu0 }
 0x10e   : > { %1541 = vmatpush.msrb.mxu3 %v356_v58  ;;  %1579 = vmatpush.msra.mxu0 %v397_v1  ;;  %v1087_v43 = vadd.f32 %v1086_v36, %v1067_v38  ;;  %v713_v1 = vperm.slane %v2489_v3, 1  ;;  %v714_v36 = vperm.slane %v2489_v3, 2 }
 0x10f   : > { %v2045_v44 = vpop.eup %2044  ;;  %1601 = vmatpush.msrb.mxu2 %v677_v35 }
 0x110   : > { %1542 = vmatpush.msrb.mxu3 %v336_v39  ;;  %1580 = vmatpush.msra.mxu0 %v377_v41  ;;  %v1949_v52 = vadd.f32 -1.0, %v2045_v44  ;;  %v1635_v53 = vmin.f32 %v1087_v43, 0.0  ;;  %vm1615_vm8 = vcmp.gt.f32.partialorder %v1087_v43, 0.0  ;;  %v715_v41 = vperm.slane %v2489_v3, 3 }
 0x111   : > { %1602 = vmatpush.msrb.mxu2 %v657_v12  ;;  %v716_v12 = vperm.slane %v2489_v3, 4 }
 0x112   : > { %1543 = vmatpush.msrb.mxu3 %v316_v46  ;;  %1581 = vmatpush.msra.mxu0 %v357_v48  ;;  %v1713_v56 = vsel %vm1613_vm6, %v2459_v7, %v1949_v52  ;;  %v1661_v59 = vmul.f32 1.442695, %v1635_v53  ;;  %v717_v46 = vperm.slane %v2489_v3, 5  ;;  %vm1763_vm6 = vcmask 523264  }
 0x113   : > { %1603 = vmatpush.msrb.mxu2 %v637_v51  ;;  %v1732_v60 = vmax.f32 %v1731_v54, %v1713_v56  ;;  %v718_v56 = vperm.slane %v2489_v3, 6 }
 0x114   : > { %1544 = vmatpush.msrb.mxu3 %v296_v19  ;;  %1582 = vmatpush.msra.mxu0 %v337_v55  ;;  %2046 = vpow2.f32 %v1661_v59 }
 0x115   : > { %1604 = vmatpush.msrb.mxu2 %v617_v57  ;;  %1545 = vmatmul.f32.vlgmr.msrb.gmra.mxu3 %v2424_v40  ;;  %v1733_v0 = vmax.f32 %v1732_v60, %v1714_v62  ;;  %v719_v60 = vperm.slane %v2489_v3, 7 }
 0x116   : > { %1944 = vmatmul.msk.f32.vlgmr.msrb.gmra.mxu2 %vm744_vm1, %v2401_v49  ;;  %1583 = vmatpush.msra.mxu0 %v317_v61 }
 0x117   : > { %v1166_v11 = vpop.f32.mrf.mxu0 }
 0x118   : > { %1584 = vmatpush.msra.mxu0 %v297_v63 }
 0x119   : > { %1585 = vmatmul.f32.vlgmr.msra.gmra.mxu0 %v2424_v40 }
 0x11a   : > { %v2047_v5 = vpop.eup %2046 }
 0x11b   : > { %v1951_v47 = vadd.f32 -1.0, %v2047_v5 }
 0x11d   : > { %v1715_v7 = vsel %vm1615_vm8, %v1087_v43, %v1951_v47 }
 0x11e   : > { %v1734_v8 = vmax.f32 %v1733_v0, %v1715_v7  ;;  %v1146_v9 = vpop.f32.mrf.mxu1  ;;  %v2511_v7 = vld [vmem:[#allocation7 + $0x10] sm:$0xf] }
 0x11f   : > { %v1147_v10 = vadd.f32 %v1146_v9, %v712_v6 }
 0x121   : > { %v1167_v49 = vadd.f32 %v1166_v11, %v1147_v10 }
 0x122   : > { %v1206_v24 = vpop.f32.mrf.mxu0 }
 0x123   : > { %v1637_v14 = vmin.f32 %v1167_v49, 0.0  ;;  %v1106_v15 = vpop.f32.mrf.mxu2  ;;  %vm1617_vm10 = vcmp.gt.f32.partialorder %v1167_v49, 0.0 }
 0x124   : > { %v1107_v16 = vadd.f32 %v1106_v15, %v711_v13 }
 0x125   : > { %v1665_v17 = vmul.f32 1.442695, %v1637_v14 }
 0x126   : > { %v1127_v4 = vadd.f32 %v1126_v2, %v1107_v16 }
 0x127   : > { %2048 = vpow2.f32 %v1665_v17 }
 0x128   : > { %v1636_v18 = vmin.f32 %v1127_v4, 0.0  ;;  %vm1616_vm9 = vcmp.gt.f32.partialorder %v1127_v4, 0.0 }
 0x12a   : > { %v1663_v40 = vmul.f32 1.442695, %v1636_v18 }
 0x12c   : > { %2050 = vpow2.f32 %v1663_v40 }
 0x12d   : > { %v2049_v20 = vpop.eup %2048  ;;  %v1246_v29 = vpop.f32.mrf.mxu0 }
 0x12e   : > { %v1953_v22 = vadd.f32 -1.0, %v2049_v20  ;;  %v720_v20 = vperm.slane %v2511_v7, 0 }
 0x12f   : > { %v1186_v33 = vpop.f32.mrf.mxu3 }
 0x130   : > { %v1717_v27 = vsel %vm1617_vm10, %v1167_v49, %v1953_v22  ;;  %v1187_v35 = vadd.f32 %v1186_v33, %v713_v1  ;;  %v721_v49 = vperm.slane %v2511_v7, 1  ;;  %v1756_v33 = vld [vmem:[%s2590_s3 + $0x28] sm:$0xff]  ;;  %vm1806_vm10 = vcmask 7168  }
 0x132   : > { %v2051_v21 = vpop.eup %2050  ;;  %v1207_v37 = vadd.f32 %v1206_v24, %v1187_v35 }
 0x133   : > { %v1952_v23 = vadd.f32 -1.0, %v2051_v21 }
 0x134   : > { %v1638_v44 = vmin.f32 %v1207_v37, 0.0  ;;  %vm1618_vm11 = vcmp.gt.f32.partialorder %v1207_v37, 0.0 }
 0x135   : > { %v1716_v25 = vsel %vm1616_vm9, %v1127_v4, %v1952_v23 }
 0x136   : > { %v1735_v26 = vmax.f32 %v1734_v8, %v1716_v25  ;;  %v1667_v53 = vmul.f32 1.442695, %v1638_v44  ;;  %v722_v44 = vperm.slane %v2511_v7, 2 }
 0x137   : > { %v1286_v30 = vpop.f32.mrf.mxu0 }
 0x138   : > { %v2494_v28 = vmax.f32 %v1735_v26, %v1717_v27  ;;  %2052 = vpow2.f32 %v1667_v53 }
 0x13e   : > { %v2053_v3 = vpop.eup %2052 }
 0x13f   : > { %v1954_v16 = vadd.f32 -1.0, %v2053_v3 }
 0x141   : > { %v1326_v31 = vpop.f32.mrf.mxu0  ;;  %v1718_v25 = vsel %vm1618_vm11, %v1207_v37, %v1954_v16 }
 0x142   : > { %v1266_v42 = vpop.f32.mrf.mxu1 }
 0x143   : > { %v1267_v48 = vadd.f32 %v1266_v42, %v715_v41  ;;  %v1755_v41 = vld [vmem:[%s2590_s3 + $0x20] sm:$0xff] }
 0x145   : > { %v2501_v55 = vadd.f32 %v1286_v30, %v1267_v48  ;;  %v1758_v30 = vld [vmem:[%s2590_s3 + $0x38] sm:$0xff] }
 0x146   : > { %1775 = vmatpush.msrb.mxu1 %v1758_v30  ;;  %v1752_v30 = vld [vmem:[%s2590_s3 + $0x8] sm:$0xff] }
 0x147   : > { %v1226_v38 = vpop.f32.mrf.mxu2  ;;  %v1640_v0 = vmin.f32 %v2501_v55, 0.0  ;;  %vm1620_vm13 = vcmp.gt.f32.partialorder %v2501_v55, 0.0 }
 0x148   : > { %v1227_v39 = vadd.f32 %v1226_v38, %v714_v36 }
 0x149   : > { %v1671_v9 = vmul.f32 1.442695, %v1640_v0 }
 0x14a   : > { %v1247_v45 = vadd.f32 %v1246_v29, %v1227_v39  ;;  %v723_v39 = vperm.slane %v2511_v7, 3 }
 0x14c   : > { %v1366_v32 = vpop.f32.mrf.mxu0  ;;  %v1639_v54 = vmin.f32 %v1247_v45, 0.0  ;;  %vm1619_vm12 = vcmp.gt.f32.partialorder %v1247_v45, 0.0 }
 0x14e   : > { %v1669_v62 = vmul.f32 1.442695, %v1639_v54 }
 0x150   : > { %2054 = vpow2.f32 %v1669_v62 }
 0x151   : > { %2056 = vpow2.f32 %v1671_v9 }
 0x153   : > { %v1306_v43 = vpop.f32.mrf.mxu3 }
 0x154   : > { %v1307_v52 = vadd.f32 %v1306_v43, %v716_v12 }
 0x156   : > { %v1406_v58 = vpop.f32.mrf.mxu0  ;;  %v2504_v57 = vadd.f32 %v1326_v31, %v1307_v52  ;;  %v2055_v4 = vpop.eup %2054  ;;  %v1757_v31 = vld [vmem:[%s2590_s3 + $0x30] sm:$0xff] }
 0x157   : > { %v1955_v22 = vadd.f32 -1.0, %v2055_v4  ;;  %1776 = vmatpush.msrb.mxu1 %v1757_v31  ;;  %v1753_v52 = vld [vmem:[%s2590_s3 + $0x10] sm:$0xff]  ;;  %v1751_v31 = vld [vmem:[%s2590_s3] sm:$0xff] }
 0x158   : > { %v1641_v5 = vmin.f32 %v2504_v57, 0.0  ;;  %vm1621_vm14 = vcmp.gt.f32.partialorder %v2504_v57, 0.0 }
 0x159   : > { %v1719_v35 = vsel %vm1619_vm12, %v1247_v45, %v1955_v22  ;;  %1777 = vmatpush.msrb.mxu1 %v1756_v33  ;;  %v1754_v45 = vld [vmem:[%s2590_s3 + $0x18] sm:$0xff] }
 0x15a   : > { %v1673_v11 = vmul.f32 1.442695, %v1641_v5 }
 0x15b   : > { %1778 = vmatpush.msrb.mxu1 %v1755_v41 }
 0x15c   : > { %2058 = vpow2.f32 %v1673_v11 }
 0x15d   : > { %1779 = vmatpush.msrb.mxu1 %v1754_v45 }
 0x15f   : > { %1780 = vmatpush.msrb.mxu1 %v1753_v52 }
 0x160   : > { %v1446_v34 = vpop.f32.mrf.mxu0 }
 0x161   : > { %1781 = vmatpush.msrb.mxu1 %v1752_v30 }
 0x163   : > { %1782 = vmatpush.msrb.mxu1 %v1751_v31 }
 0x166   : > { %v1386_v59 = vpop.f32.mrf.mxu1 }
 0x167   : > { %v1387_v2 = vadd.f32 %v1386_v59, %v718_v56 }
 0x169   : > { %v2514_v10 = vadd.f32 %v1406_v58, %v1387_v2 }
 0x16b   : > { %v1346_v50 = vpop.f32.mrf.mxu2  ;;  %v1486_v51 = vpop.f32.mrf.mxu0  ;;  %v1643_v17 = vmin.f32 %v2514_v10, 0.0  ;;  %vm1623_vm0 = vcmp.gt.f32.partialorder %v2514_v10, 0.0 }
 0x16c   : > { %v1347_v19 = vadd.f32 %v1346_v50, %v717_v46 }
 0x16d   : > { %v1677_v23 = vmul.f32 1.442695, %v1643_v17 }
 0x16e   : > { %v2507_v63 = vadd.f32 %v1366_v32, %v1347_v19  ;;  %v2057_v32 = vpop.eup %2056 }
 0x16f   : > { %v2059_v58 = vpop.eup %2058  ;;  %v1956_v42 = vadd.f32 -1.0, %v2057_v32 }
 0x170   : > { %v1642_v8 = vmin.f32 %v2507_v63, 0.0  ;;  %v1957_v12 = vadd.f32 -1.0, %v2059_v58  ;;  %vm1622_vm15 = vcmp.gt.f32.partialorder %v2507_v63, 0.0  ;;  %v2033_v58 = vld [vmem:[#allocation2] ss:$0 sm:$0xff] }
 0x171   : > { %v1720_v54 = vsel %vm1620_vm13, %v2501_v55, %v1956_v42 }
 0x172   : > { %v1675_v15 = vmul.f32 1.442695, %v1642_v8  ;;  %v1721_v19 = vsel %vm1621_vm14, %v2504_v57, %v1957_v12 }
 0x174   : > { %2060 = vpow2.f32 %v1675_v15 }
 0x175   : > { %2062 = vpow2.f32 %v1677_v23 }
 0x176   : > { %v1526_v6 = vpop.f32.mrf.mxu0 }
 0x177   : > { %v1426_v61 = vpop.f32.mrf.mxu3 }
 0x178   : > { %v1427_v47 = vadd.f32 %v1426_v61, %v719_v60 }
 0x17a   : > { %v2516_v13 = vadd.f32 %v1446_v34, %v1427_v47  ;;  %v1737_v34 = vmax.f32 %v2494_v28, %v1718_v25  ;;  %v2061_v36 = vpop.eup %2060 }
 0x17b   : > { %v1958_v46 = vadd.f32 -1.0, %v2061_v36  ;;  %v2063_v53 = vpop.eup %2062 }
 0x17c   : > { %v1644_v18 = vmin.f32 %v2516_v13, 0.0  ;;  %v1738_v43 = vmax.f32 %v1737_v34, %v1719_v35  ;;  %vm1624_vm1 = vcmp.gt.f32.partialorder %v2516_v13, 0.0 }
 0x17d   : > { %v1722_v0 = vsel %vm1622_vm15, %v2507_v63, %v1958_v46 }
 0x17e   : > { %v1679_v26 = vmul.f32 1.442695, %v1644_v18  ;;  %v1739_v60 = vmax.f32 %v1738_v43, %v1720_v54 }
 0x180   : > { %2064 = vpow2.f32 %v1679_v26  ;;  %v1740_v5 = vmax.f32 %v1739_v60, %v1721_v19 }
 0x182   : > { %v1741_v57 = vmax.f32 %v1740_v5, %v1722_v0 }
 0x186   : > { %v2065_v59 = vpop.eup %2064 }
 0x187   : > { %v1960_v7 = vadd.f32 -1.0, %v2065_v59 }
 0x188   : > { %v1506_v14 = vpop.f32.mrf.mxu1 }
 0x189   : > { %v1507_v40 = vadd.f32 %v1506_v14, %v721_v49  ;;  %v1724_v14 = vsel %vm1624_vm1, %v2516_v13, %v1960_v7 }
 0x18a   : > { %v1566_v21 = vpop.f32.mrf.mxu0 }
 0x18b   : > { %v2522_v27 = vadd.f32 %v1526_v6, %v1507_v40  ;;  %v1959_v6 = vadd.f32 -1.0, %v2063_v53 }
 0x18d   : > { %v1646_v38 = vmin.f32 %v2522_v27, 0.0  ;;  %v1723_v63 = vsel %vm1623_vm0, %v2514_v10, %v1959_v6  ;;  %vm1626_vm3 = vcmp.gt.f32.partialorder %v2522_v27, 0.0 }
 0x18e   : > { %v1466_v24 = vpop.f32.mrf.mxu2  ;;  %v1742_v16 = vmax.f32 %v1741_v57, %v1723_v63 }
 0x18f   : > { %v1467_v29 = vadd.f32 %v1466_v24, %v720_v20  ;;  %v1683_v50 = vmul.f32 1.442695, %v1646_v38 }
 0x190   : > { %v1743_v4 = vmax.f32 %v1742_v16, %v1724_v14 }
 0x191   : > { %v2530_v1 = vadd.f32 %v1486_v51, %v1467_v29 }
 0x193   : > { %v1645_v37 = vmin.f32 %v2530_v1, 0.0  ;;  %vm1625_vm2 = vcmp.gt.f32.partialorder %v2530_v1, 0.0 }
 0x195   : > { %v1681_v28 = vmul.f32 1.442695, %v1645_v37 }
 0x196   : > { %v1586_v48 = vpop.f32.mrf.mxu0 }
 0x197   : > { %2066 = vpow2.f32 %v1681_v28  ;;  %v1587_v51 = vadd.f32 %v1586_v48, %v723_v39 }
 0x198   : > { %v1546_v56 = vpop.f32.mrf.mxu3  ;;  %2068 = vpow2.f32 %v1683_v50 }
 0x199   : > { %v1547_v61 = vadd.f32 %v1546_v56, %v722_v44  ;;  %v1606_v62 = vpop.f32.mrf.mxu2 }
 0x19a   : > { %v1607_v2 = vadd.f32 %v1606_v62, %v1587_v51 }
 0x19b   : > { %v1567_v47 = vadd.f32 %v1566_v21, %v1547_v61 }
 0x19c   : > { %v1648_v55 = vmin.f32 %v1607_v2, 0.0  ;;  %vm1628_vm5 = vcmp.gt.f32.partialorder %v1607_v2, 0.0 }
 0x19d   : > { %v2067_v8 = vpop.eup %2066  ;;  %v1647_v9 = vmin.f32 %v1567_v47, 0.0  ;;  %vm1627_vm4 = vcmp.gt.f32.partialorder %v1567_v47, 0.0 }
 0x19e   : > { %v1961_v3 = vadd.f32 -1.0, %v2067_v8  ;;  %v1687_v11 = vmul.f32 1.442695, %v1648_v55  ;;  %v2069_v15 = vpop.eup %2068 }
 0x19f   : > { %v1685_v49 = vmul.f32 1.442695, %v1647_v9  ;;  %v1962_v18 = vadd.f32 -1.0, %v2069_v15 }
 0x1a0   : > { %2070 = vpow2.f32 %v1687_v11  ;;  %v1725_v17 = vsel %vm1625_vm2, %v2530_v1, %v1961_v3 }
 0x1a1   : > { %2072 = vpow2.f32 %v1685_v49  ;;  %v1744_v40 = vmax.f32 %v1743_v4, %v1725_v17  ;;  %v1726_v10 = vsel %vm1626_vm3, %v2522_v27, %v1962_v18 }
 0x1a3   : > { %v1745_v13 = vmax.f32 %v1744_v40, %v1726_v10 }
 0x1a6   : > { %v2071_v20 = vpop.eup %2070 }
 0x1a7   : > { %v2073_v21 = vpop.eup %2072  ;;  %v1964_v23 = vadd.f32 -1.0, %v2071_v20 }
 0x1a8   : > { %v1963_v22 = vadd.f32 -1.0, %v2073_v21 }
 0x1a9   : > { %v1728_v26 = vsel %vm1628_vm5, %v1607_v2, %v1964_v23 }
 0x1aa   : > { %v1727_v24 = vsel %vm1627_vm4, %v1567_v47, %v1963_v22 }
 0x1ab   : > { %v1746_v25 = vmax.f32 %v1745_v13, %v1727_v24 }
 0x1ad   : > { %v1747_v29 = vmax.f32 %v1746_v25, %v1728_v26 }
 0x1af   : > { %1748 = vrot.lane.b32.xlu0 %v1747_v29, %s2214_s8 }
 0x221   : > { %v1749_v27 = vpop.permute.xlu0 %1748 }
 0x222   : > { %v1750_v32 = vmax.f32 %v1747_v29, %v1749_v27 }
 0x224   : > { %1965 = vmatmul.msk.f32.vlgmr.msrb.gmra.mxu1 %vm1763_vm6, %v1750_v32 }
 0x2a1   : > { %v1784_v1 = vpop.f32.mrf.mxu1 }
 0x2a2   : > { %v1785_v33 = vadd.f32 %v2033_v58, %v1784_v1 }
 0x2a4   : > { %v1966_v34 = vmul.f32 -1.442695, %v1785_v33 }
 0x2a6   : > { %2074 = vpow2.f32 %v1966_v34 }
 0x2ac   : > { %v2075_v35 = vpop.eup %2074 }
 0x2ad   : > { %v1790_v36 = vadd.f32 1.0, %v2075_v35 }
 0x2af   : > { %2076 = vrcp.f32 %v1790_v36  ;;  %v1802_v41 = vand.u32 2147483648, %v1790_v36  ;;  %v1800_v12 = vand.u32 2147483647, %v1790_v36  ;;  %vm1796_vm8 = vweird.f32 %v1790_v36 }
 0x2b1   : > { %v1803_v28 = vor.u32 1.1754944e-38, %v1802_v41  ;;  %vm1801_vm11 = vcmp.eq.f32.partialorder %v1800_v12, 8.507059e+37 }
 0x2b5   : > { %v2077_v38 = vpop.eup %2076 }
 0x2b6   : > { %v1792_v37 = vmul.f32 %v2077_v38, %v1790_v36  ;;  %vm1797_vm7 = vweird.f32 %v2077_v38 }
 0x2b7   : > { %vm1798_vm9 = vmor %vm1796_vm8, %vm1797_vm7 }
 0x2b8   : > { %v1793_v39 = vsub.f32 1.0, %v1792_v37 }
 0x2ba   : > { %v1794_v42 = vmul.f32 %v2077_v38, %v1793_v39 }
 0x2bc   : > { %v1795_v43 = vadd.f32 %v2077_v38, %v1794_v42 }
 0x2be   : > { %v1799_v44 = vsel %vm1798_vm9, %v2077_v38, %v1795_v43 }
 0x2bf   : > { %v1804_v45 = vsel %vm1801_vm11, %v1803_v28, %v1799_v44 }
 0x2c0   : > { %1807 = vst.msk [vmem:[%s275_s19] sm:$0xff] %vm1806_vm10, %v1804_v45 }
 0x2c1 PF: > { %p18_p3 = scmp.ge.s32.totalorder %s2289_s12, 4   ;;  %s2596_s20 = smov %s2200_s21 }
 0x2c2   : > { %s2597_s21 = smov %s2204_s22  ;;  %s2598_s22 = smov %s2300_s15 }
 0x2c3   : > { %s2599_s23 = smov %s2289_s12  ;;  %20 = sbr.rel (!%p18_p3) target bundleno = 7 (0x7), region = 88 }
 0x2c8   :  { %1827 = vsyncpa [#allocation4], 1 }
 0x2c9   :  { %1829 = vsyncpa [#allocation4 + $0x1], 1 }
 0x2ca   :  { %1830 = vsyncpa [#allocation6], 1 }

</bundles_post_ra>
